<compile_context>
chip_gen: v6e
topology: v6e:2x2x1
jax: 0.10.0
libtpu: 0.0.40
codegen_flags: <defaults>
</compile_context>

<pallas_src>
import numpy as np
import jax
import jax.numpy as jnp
from jax import lax
from jax.experimental import pallas as pl
from jax.experimental.pallas import tpu as pltpu

N_QUBITS = 7          # -> statevector dim 128 == one lane register
VQC_DEPTH = 3
N_CLASS = 4
BATCH = 8
DIM = 2 ** N_QUBITS


# ----------------------------------------------------------------------------
# Static measurement table (numpy, built once; passed as a constant input).
# zmat[p, i] = +1 if bit_p(i)==0 else -1   (PauliZ eigenvalue on wire p)
# ----------------------------------------------------------------------------
def _zmat_table(n_qubits, n_class):
    dim = 2 ** n_qubits
    idx = np.arange(dim)
    bit = lambda i, w: (i >> (n_qubits - 1 - w)) & 1   # wire 0 == MSB
    return np.stack([1.0 - 2.0 * bit(idx, p) for p in range(n_class)],
                    axis=0).astype(np.float32)


# ----------------------------------------------------------------------------
# Pallas kernel: full circuit (encode -> depth x [entangler, RY layer] -> <Z>).
# ----------------------------------------------------------------------------
def vqc_kernel(x_ref, cw_ref, sw_ref, zmat_ref, out_ref):
    B, n_q = x_ref.shape
    depth = cw_ref.shape[0]
    dim = zmat_ref.shape[1]

    # Wire w <-> bit (n_q-1-w) of the state index.  Boolean lane masks, built
    # once from a 2-D iota (hoisted; 7 vregs).
    lane = lax.broadcasted_iota(jnp.int32, (B, dim), dimension=1)
    mask = [((lane >> (n_q - 1 - w)) & 1) == 1 for w in range(n_q)]   # bit==1

    def xor_rolls(v, m):
        # v[..., j ^ m] = where(bit_m(j)==1, v[j-m], v[j+m]); XLU lane rotates.
        fwd = pltpu.roll(v, m, axis=1)          # fwd[j] = v[(j - m) % dim]
        bwd = pltpu.roll(v, dim - m, axis=1)    # bwd[j] = v[(j + m) % dim]
        return fwd, bwd

    # ---- H layer + RY(x) encoding: product state (VPU / EUP only) ----------
    cx = jnp.cos(x_ref[...] * 0.5)              # [B, n_q]
    sx = jnp.sin(x_ref[...] * 0.5)
    state = jnp.full((B, dim), float(1.0 / np.sqrt(dim)), dtype=jnp.float32)
    for w in range(n_q):
        plus = cx[:, w:w + 1] + sx[:, w:w + 1]   # factor for bit_w == 1
        minus = cx[:, w:w + 1] - sx[:, w:w + 1]  # factor for bit_w == 0
        state = state * jnp.where(mask[w], plus, minus)

    # ---- depth x (CNOT entangler -> trainable RY layer), fully in-kernel ---
    cnot_pairs = [(i, i + 1) for i in range(0, n_q - 1, 2)] + \
                 [(i, i + 1) for i in range(1, n_q - 1, 2)]
    for k in range(depth):
        # Entangling layer: each CNOT(c, t) is a conditional xor-select.
        for (c, t) in cnot_pairs:
            m = 1 << (n_q - 1 - t)
            fwd, bwd = xor_rolls(state, m)
            partner = jnp.where(mask[t], fwd, bwd)          # state[j ^ m]
            state = jnp.where(mask[c], partner, state)
        # Trainable RY rotations; half-angle cos/sin are SMEM scalars.
        for w in range(n_q):
            m = 1 << (n_q - 1 - w)
            c_s = cw_ref[k, w]
            s_s = sw_ref[k, w]
            fwd, bwd = xor_rolls(state, m)
            signed_partner = jnp.where(mask[w], fwd, -bwd)   # +/- state[j ^ m]
            state = c_s * state + s_s * signed_partner

    # ---- <Z_p> = sum_i |amp_i|^2 * (+/-1): exact f32 VPU + XLU reduce ------
    probs = state * state                                     # [B, dim]
    out_ref[...] = jnp.sum(probs[:, None, :] * zmat_ref[...][None, :, :],
                           axis=-1)                           # [B, n_class]


# ----------------------------------------------------------------------------
# Wrapper: the only wrapper-side math is cos/sin of the 3x7 shared weights.
# ----------------------------------------------------------------------------
@jax.jit
def torch_vqc_forward(x, weights, zmat):
    B, n_q = x.shape
    depth = weights.shape[0]
    n_class, dim = zmat.shape

    cw = jnp.cos(weights * 0.5)     # [depth, n_q]
    sw = jnp.sin(weights * 0.5)

    n_gates = n_q + depth * ((n_q - 1) + n_q)   # encode + CNOTs + RYs
    cost = pl.CostEstimate(
        flops=12 * B * dim * n_gates,
        transcendentals=2 * B * n_q,
        bytes_accessed=4 * (B * n_q + 2 * depth * n_q + n_class * dim
                            + B * n_class))

    vmem = lambda: pl.BlockSpec(memory_space=pltpu.MemorySpace.VMEM)
    smem = lambda: pl.BlockSpec(memory_space=pltpu.MemorySpace.SMEM)

    # Single-block, gridless launch: the whole working set (<10 KiB) lives in
    # VMEM.  (For BATCH >> 8, add grid=(pl.cdiv(B, TILE_B),) over batch with
    # dimension_semantics=("parallel",) to use v7x's second TensorCore.)
    return pl.pallas_call(
        vqc_kernel,
        out_shape=jax.ShapeDtypeStruct((B, n_class), jnp.float32),
        in_specs=[vmem(), smem(), smem(), vmem()],
        out_specs=vmem(),
        cost_estimate=cost,
    )(x, cw, sw, zmat)


# ----------------------------------------------------------------------------
# Pure-numpy reference (independent statevector simulation) for validation.
# ----------------------------------------------------------------------------
def reference_vqc(X, weights, n_class):
    n_q = X.shape[1]
    depth = weights.shape[0]

    def apply_1q(state, gate, wire):
        return np.moveaxis(np.tensordot(gate, state, axes=([1], [wire])),
                           0, wire)

    def apply_cnot(state, c, t):
        state = state.copy()
        idx = [slice(None)] * n_q
        idx[c] = 1
        sub = state[tuple(idx)]
        t_ax = t - 1 if t > c else t
        state[tuple(idx)] = np.flip(sub, axis=t_ax).copy()
        return state

    H = np.array([[1.0, 1.0], [1.0, -1.0]], np.float64) / np.sqrt(2.0)

    def RY(theta):
        c, s = np.cos(theta / 2.0), np.sin(theta / 2.0)
        return np.array([[c, -s], [s, c]], np.float64)

    outs = []
    for x in X:
        state = np.zeros((2,) * n_q, np.float64)
        state[(0,) * n_q] = 1.0
        for w in range(n_q):
            state = apply_1q(state, H, w)
        for w in range(n_q):
            state = apply_1q(state, RY(x[w]), w)
        for k in range(depth):
            for i in range(0, n_q - 1, 2):
                state = apply_cnot(state, i, i + 1)
            for i in range(1, n_q - 1, 2):
                state = apply_cnot(state, i, i + 1)
            for w in range(n_q):
                state = apply_1q(state, RY(weights[k, w]), w)
        probs = state ** 2
        exp = []
        for p in range(n_class):
            pp = np.moveaxis(probs, p, 0)
            exp.append(pp[0].sum() - pp[1].sum())
        outs.append(exp)
    return np.array(outs, np.float32)


if __name__ == "__main__":
    key = jax.random.PRNGKey(0)
    kx, kw = jax.random.split(key)

    # inputs / parameters (deterministic; weights ~ 0.01 * randn as in __init__)
    X = jax.random.uniform(kx, (BATCH, N_QUBITS), jnp.float32,
                           minval=0.0, maxval=float(np.pi))
    weights = 0.01 * jax.random.normal(kw, (VQC_DEPTH, N_QUBITS), jnp.float32)
    zmat = jnp.asarray(_zmat_table(N_QUBITS, N_CLASS))

    y = torch_vqc_forward(X, weights, zmat)
    y = jax.block_until_ready(y)

    y_ref = reference_vqc(np.asarray(X, np.float64),
                          np.asarray(weights, np.float64), N_CLASS)
    np.testing.assert_allclose(np.asarray(y), y_ref, atol=1e-4, rtol=1e-4)
    print("KERNEL_OK")
</pallas_src>

<mosaic_0001>
module attributes {stable_mosaic.version = 11 : i64} {
  func.func @vqc_kernel(%arg0: memref<8x7xf32, #tpu.memory_space<vmem>>, %arg1: memref<3x7xf32, #tpu.memory_space<smem>>, %arg2: memref<3x7xf32, #tpu.memory_space<smem>>, %arg3: memref<4x128xf32, #tpu.memory_space<vmem>>, %arg4: memref<8x4xf32, #tpu.memory_space<vmem>>) attributes {dimension_semantics = [], scalar_prefetch = 0 : i64, scratch_operands = 0 : i64, tpu.core_type = #tpu.core_type<tc>} {
    %0 = tpu.iota {dimensions = array<i32: 1>} : vector<8x128xi32>
    %c6_i32 = arith.constant 6 : i32
    %1 = vector.broadcast %c6_i32 : i32 to vector<8x128xi32>
    %2 = arith.shrsi %0, %1 : vector<8x128xi32>
    %c1_i32 = arith.constant 1 : i32
    %3 = vector.broadcast %c1_i32 : i32 to vector<8x128xi32>
    %4 = arith.andi %2, %3 : vector<8x128xi32>
    %c1_i32_0 = arith.constant 1 : i32
    %5 = vector.broadcast %c1_i32_0 : i32 to vector<8x128xi32>
    %6 = arith.cmpi eq, %4, %5 : vector<8x128xi32>
    %c5_i32 = arith.constant 5 : i32
    %7 = vector.broadcast %c5_i32 : i32 to vector<8x128xi32>
    %8 = arith.shrsi %0, %7 : vector<8x128xi32>
    %c1_i32_1 = arith.constant 1 : i32
    %9 = vector.broadcast %c1_i32_1 : i32 to vector<8x128xi32>
    %10 = arith.andi %8, %9 : vector<8x128xi32>
    %c1_i32_2 = arith.constant 1 : i32
    %11 = vector.broadcast %c1_i32_2 : i32 to vector<8x128xi32>
    %12 = arith.cmpi eq, %10, %11 : vector<8x128xi32>
    %c4_i32 = arith.constant 4 : i32
    %13 = vector.broadcast %c4_i32 : i32 to vector<8x128xi32>
    %14 = arith.shrsi %0, %13 : vector<8x128xi32>
    %c1_i32_3 = arith.constant 1 : i32
    %15 = vector.broadcast %c1_i32_3 : i32 to vector<8x128xi32>
    %16 = arith.andi %14, %15 : vector<8x128xi32>
    %c1_i32_4 = arith.constant 1 : i32
    %17 = vector.broadcast %c1_i32_4 : i32 to vector<8x128xi32>
    %18 = arith.cmpi eq, %16, %17 : vector<8x128xi32>
    %c3_i32 = arith.constant 3 : i32
    %19 = vector.broadcast %c3_i32 : i32 to vector<8x128xi32>
    %20 = arith.shrsi %0, %19 : vector<8x128xi32>
    %c1_i32_5 = arith.constant 1 : i32
    %21 = vector.broadcast %c1_i32_5 : i32 to vector<8x128xi32>
    %22 = arith.andi %20, %21 : vector<8x128xi32>
    %c1_i32_6 = arith.constant 1 : i32
    %23 = vector.broadcast %c1_i32_6 : i32 to vector<8x128xi32>
    %24 = arith.cmpi eq, %22, %23 : vector<8x128xi32>
    %c2_i32 = arith.constant 2 : i32
    %25 = vector.broadcast %c2_i32 : i32 to vector<8x128xi32>
    %26 = arith.shrsi %0, %25 : vector<8x128xi32>
    %c1_i32_7 = arith.constant 1 : i32
    %27 = vector.broadcast %c1_i32_7 : i32 to vector<8x128xi32>
    %28 = arith.andi %26, %27 : vector<8x128xi32>
    %c1_i32_8 = arith.constant 1 : i32
    %29 = vector.broadcast %c1_i32_8 : i32 to vector<8x128xi32>
    %30 = arith.cmpi eq, %28, %29 : vector<8x128xi32>
    %c1_i32_9 = arith.constant 1 : i32
    %31 = vector.broadcast %c1_i32_9 : i32 to vector<8x128xi32>
    %32 = arith.shrsi %0, %31 : vector<8x128xi32>
    %c1_i32_10 = arith.constant 1 : i32
    %33 = vector.broadcast %c1_i32_10 : i32 to vector<8x128xi32>
    %34 = arith.andi %32, %33 : vector<8x128xi32>
    %c1_i32_11 = arith.constant 1 : i32
    %35 = vector.broadcast %c1_i32_11 : i32 to vector<8x128xi32>
    %36 = arith.cmpi eq, %34, %35 : vector<8x128xi32>
    %c0_i32 = arith.constant 0 : i32
    %37 = vector.broadcast %c0_i32 : i32 to vector<8x128xi32>
    %38 = arith.shrsi %0, %37 : vector<8x128xi32>
    %c1_i32_12 = arith.constant 1 : i32
    %39 = vector.broadcast %c1_i32_12 : i32 to vector<8x128xi32>
    %40 = arith.andi %38, %39 : vector<8x128xi32>
    %c1_i32_13 = arith.constant 1 : i32
    %41 = vector.broadcast %c1_i32_13 : i32 to vector<8x128xi32>
    %42 = arith.cmpi eq, %40, %41 : vector<8x128xi32>
    %c0 = arith.constant 0 : index
    %c0_14 = arith.constant 0 : index
    %43 = vector.load %arg0[%c0, %c0_14] : memref<8x7xf32, #tpu.memory_space<vmem>>, vector<8x7xf32>
    %cst = arith.constant 5.000000e-01 : f32
    %44 = vector.broadcast %cst : f32 to vector<8x7xf32>
    %45 = arith.mulf %43, %44 : vector<8x7xf32>
    %46 = math.cos %45 : vector<8x7xf32>
    %c0_15 = arith.constant 0 : index
    %c0_16 = arith.constant 0 : index
    %47 = vector.load %arg0[%c0_15, %c0_16] : memref<8x7xf32, #tpu.memory_space<vmem>>, vector<8x7xf32>
    %cst_17 = arith.constant 5.000000e-01 : f32
    %48 = vector.broadcast %cst_17 : f32 to vector<8x7xf32>
    %49 = arith.mulf %47, %48 : vector<8x7xf32>
    %50 = math.sin %49 : vector<8x7xf32>
    %cst_18 = arith.constant 0.0883883461 : f32
    %51 = vector.broadcast %cst_18 : f32 to vector<8x128xf32>
    %52 = vector.extract_strided_slice %46 {offsets = [0, 0], sizes = [8, 1], strides = [1, 1]} : vector<8x7xf32> to vector<8x1xf32>
    %53 = vector.extract_strided_slice %50 {offsets = [0, 0], sizes = [8, 1], strides = [1, 1]} : vector<8x7xf32> to vector<8x1xf32>
    %54 = arith.addf %52, %53 : vector<8x1xf32>
    %55 = vector.extract_strided_slice %46 {offsets = [0, 0], sizes = [8, 1], strides = [1, 1]} : vector<8x7xf32> to vector<8x1xf32>
    %56 = vector.extract_strided_slice %50 {offsets = [0, 0], sizes = [8, 1], strides = [1, 1]} : vector<8x7xf32> to vector<8x1xf32>
    %57 = arith.subf %55, %56 : vector<8x1xf32>
    %58 = vector.shape_cast %54 : vector<8x1xf32> to vector<8x1xf32>
    %59 = vector.broadcast %58 : vector<8x1xf32> to vector<8x128xf32>
    %60 = vector.shape_cast %57 : vector<8x1xf32> to vector<8x1xf32>
    %61 = vector.broadcast %60 : vector<8x1xf32> to vector<8x128xf32>
    %62 = arith.select %6, %59, %61 : vector<8x128xi1>, vector<8x128xf32>
    %63 = arith.mulf %51, %62 : vector<8x128xf32>
    %64 = vector.extract_strided_slice %46 {offsets = [0, 1], sizes = [8, 1], strides = [1, 1]} : vector<8x7xf32> to vector<8x1xf32>
    %65 = vector.extract_strided_slice %50 {offsets = [0, 1], sizes = [8, 1], strides = [1, 1]} : vector<8x7xf32> to vector<8x1xf32>
    %66 = arith.addf %64, %65 : vector<8x1xf32>
    %67 = vector.extract_strided_slice %46 {offsets = [0, 1], sizes = [8, 1], strides = [1, 1]} : vector<8x7xf32> to vector<8x1xf32>
    %68 = vector.extract_strided_slice %50 {offsets = [0, 1], sizes = [8, 1], strides = [1, 1]} : vector<8x7xf32> to vector<8x1xf32>
    %69 = arith.subf %67, %68 : vector<8x1xf32>
    %70 = vector.shape_cast %66 : vector<8x1xf32> to vector<8x1xf32>
    %71 = vector.broadcast %70 : vector<8x1xf32> to vector<8x128xf32>
    %72 = vector.shape_cast %69 : vector<8x1xf32> to vector<8x1xf32>
    %73 = vector.broadcast %72 : vector<8x1xf32> to vector<8x128xf32>
    %74 = arith.select %12, %71, %73 : vector<8x128xi1>, vector<8x128xf32>
    %75 = arith.mulf %63, %74 : vector<8x128xf32>
    %76 = vector.extract_strided_slice %46 {offsets = [0, 2], sizes = [8, 1], strides = [1, 1]} : vector<8x7xf32> to vector<8x1xf32>
    %77 = vector.extract_strided_slice %50 {offsets = [0, 2], sizes = [8, 1], strides = [1, 1]} : vector<8x7xf32> to vector<8x1xf32>
    %78 = arith.addf %76, %77 : vector<8x1xf32>
    %79 = vector.extract_strided_slice %46 {offsets = [0, 2], sizes = [8, 1], strides = [1, 1]} : vector<8x7xf32> to vector<8x1xf32>
    %80 = vector.extract_strided_slice %50 {offsets = [0, 2], sizes = [8, 1], strides = [1, 1]} : vector<8x7xf32> to vector<8x1xf32>
    %81 = arith.subf %79, %80 : vector<8x1xf32>
    %82 = vector.shape_cast %78 : vector<8x1xf32> to vector<8x1xf32>
    %83 = vector.broadcast %82 : vector<8x1xf32> to vector<8x128xf32>
    %84 = vector.shape_cast %81 : vector<8x1xf32> to vector<8x1xf32>
    %85 = vector.broadcast %84 : vector<8x1xf32> to vector<8x128xf32>
    %86 = arith.select %18, %83, %85 : vector<8x128xi1>, vector<8x128xf32>
    %87 = arith.mulf %75, %86 : vector<8x128xf32>
    %88 = vector.extract_strided_slice %46 {offsets = [0, 3], sizes = [8, 1], strides = [1, 1]} : vector<8x7xf32> to vector<8x1xf32>
    %89 = vector.extract_strided_slice %50 {offsets = [0, 3], sizes = [8, 1], strides = [1, 1]} : vector<8x7xf32> to vector<8x1xf32>
    %90 = arith.addf %88, %89 : vector<8x1xf32>
    %91 = vector.extract_strided_slice %46 {offsets = [0, 3], sizes = [8, 1], strides = [1, 1]} : vector<8x7xf32> to vector<8x1xf32>
    %92 = vector.extract_strided_slice %50 {offsets = [0, 3], sizes = [8, 1], strides = [1, 1]} : vector<8x7xf32> to vector<8x1xf32>
    %93 = arith.subf %91, %92 : vector<8x1xf32>
    %94 = vector.shape_cast %90 : vector<8x1xf32> to vector<8x1xf32>
    %95 = vector.broadcast %94 : vector<8x1xf32> to vector<8x128xf32>
    %96 = vector.shape_cast %93 : vector<8x1xf32> to vector<8x1xf32>
    %97 = vector.broadcast %96 : vector<8x1xf32> to vector<8x128xf32>
    %98 = arith.select %24, %95, %97 : vector<8x128xi1>, vector<8x128xf32>
    %99 = arith.mulf %87, %98 : vector<8x128xf32>
    %100 = vector.extract_strided_slice %46 {offsets = [0, 4], sizes = [8, 1], strides = [1, 1]} : vector<8x7xf32> to vector<8x1xf32>
    %101 = vector.extract_strided_slice %50 {offsets = [0, 4], sizes = [8, 1], strides = [1, 1]} : vector<8x7xf32> to vector<8x1xf32>
    %102 = arith.addf %100, %101 : vector<8x1xf32>
    %103 = vector.extract_strided_slice %46 {offsets = [0, 4], sizes = [8, 1], strides = [1, 1]} : vector<8x7xf32> to vector<8x1xf32>
    %104 = vector.extract_strided_slice %50 {offsets = [0, 4], sizes = [8, 1], strides = [1, 1]} : vector<8x7xf32> to vector<8x1xf32>
    %105 = arith.subf %103, %104 : vector<8x1xf32>
    %106 = vector.shape_cast %102 : vector<8x1xf32> to vector<8x1xf32>
    %107 = vector.broadcast %106 : vector<8x1xf32> to vector<8x128xf32>
    %108 = vector.shape_cast %105 : vector<8x1xf32> to vector<8x1xf32>
    %109 = vector.broadcast %108 : vector<8x1xf32> to vector<8x128xf32>
    %110 = arith.select %30, %107, %109 : vector<8x128xi1>, vector<8x128xf32>
    %111 = arith.mulf %99, %110 : vector<8x128xf32>
    %112 = vector.extract_strided_slice %46 {offsets = [0, 5], sizes = [8, 1], strides = [1, 1]} : vector<8x7xf32> to vector<8x1xf32>
    %113 = vector.extract_strided_slice %50 {offsets = [0, 5], sizes = [8, 1], strides = [1, 1]} : vector<8x7xf32> to vector<8x1xf32>
    %114 = arith.addf %112, %113 : vector<8x1xf32>
    %115 = vector.extract_strided_slice %46 {offsets = [0, 5], sizes = [8, 1], strides = [1, 1]} : vector<8x7xf32> to vector<8x1xf32>
    %116 = vector.extract_strided_slice %50 {offsets = [0, 5], sizes = [8, 1], strides = [1, 1]} : vector<8x7xf32> to vector<8x1xf32>
    %117 = arith.subf %115, %116 : vector<8x1xf32>
    %118 = vector.shape_cast %114 : vector<8x1xf32> to vector<8x1xf32>
    %119 = vector.broadcast %118 : vector<8x1xf32> to vector<8x128xf32>
    %120 = vector.shape_cast %117 : vector<8x1xf32> to vector<8x1xf32>
    %121 = vector.broadcast %120 : vector<8x1xf32> to vector<8x128xf32>
    %122 = arith.select %36, %119, %121 : vector<8x128xi1>, vector<8x128xf32>
    %123 = arith.mulf %111, %122 : vector<8x128xf32>
    %124 = vector.extract_strided_slice %46 {offsets = [0, 6], sizes = [8, 1], strides = [1, 1]} : vector<8x7xf32> to vector<8x1xf32>
    %125 = vector.extract_strided_slice %50 {offsets = [0, 6], sizes = [8, 1], strides = [1, 1]} : vector<8x7xf32> to vector<8x1xf32>
    %126 = arith.addf %124, %125 : vector<8x1xf32>
    %127 = vector.extract_strided_slice %46 {offsets = [0, 6], sizes = [8, 1], strides = [1, 1]} : vector<8x7xf32> to vector<8x1xf32>
    %128 = vector.extract_strided_slice %50 {offsets = [0, 6], sizes = [8, 1], strides = [1, 1]} : vector<8x7xf32> to vector<8x1xf32>
    %129 = arith.subf %127, %128 : vector<8x1xf32>
    %130 = vector.shape_cast %126 : vector<8x1xf32> to vector<8x1xf32>
    %131 = vector.broadcast %130 : vector<8x1xf32> to vector<8x128xf32>
    %132 = vector.shape_cast %129 : vector<8x1xf32> to vector<8x1xf32>
    %133 = vector.broadcast %132 : vector<8x1xf32> to vector<8x128xf32>
    %134 = arith.select %42, %131, %133 : vector<8x128xi1>, vector<8x128xf32>
    %135 = arith.mulf %123, %134 : vector<8x128xf32>
    %c32_i32 = arith.constant 32 : i32
    %136 = tpu.dynamic_rotate %135 by %c32_i32 dim 1 : vector<8x128xf32>, i32 -> vector<8x128xf32>
    %c96_i32 = arith.constant 96 : i32
    %137 = tpu.dynamic_rotate %135 by %c96_i32 dim 1 : vector<8x128xf32>, i32 -> vector<8x128xf32>
    %138 = arith.select %12, %136, %137 : vector<8x128xi1>, vector<8x128xf32>
    %139 = arith.select %6, %138, %135 : vector<8x128xi1>, vector<8x128xf32>
    %c8_i32 = arith.constant 8 : i32
    %140 = tpu.dynamic_rotate %139 by %c8_i32 dim 1 : vector<8x128xf32>, i32 -> vector<8x128xf32>
    %c120_i32 = arith.constant 120 : i32
    %141 = tpu.dynamic_rotate %139 by %c120_i32 dim 1 : vector<8x128xf32>, i32 -> vector<8x128xf32>
    %142 = arith.select %24, %140, %141 : vector<8x128xi1>, vector<8x128xf32>
    %143 = arith.select %18, %142, %139 : vector<8x128xi1>, vector<8x128xf32>
    %c2_i32_19 = arith.constant 2 : i32
    %144 = tpu.dynamic_rotate %143 by %c2_i32_19 dim 1 : vector<8x128xf32>, i32 -> vector<8x128xf32>
    %c126_i32 = arith.constant 126 : i32
    %145 = tpu.dynamic_rotate %143 by %c126_i32 dim 1 : vector<8x128xf32>, i32 -> vector<8x128xf32>
    %146 = arith.select %36, %144, %145 : vector<8x128xi1>, vector<8x128xf32>
    %147 = arith.select %30, %146, %143 : vector<8x128xi1>, vector<8x128xf32>
    %c16_i32 = arith.constant 16 : i32
    %148 = tpu.dynamic_rotate %147 by %c16_i32 dim 1 : vector<8x128xf32>, i32 -> vector<8x128xf32>
    %c112_i32 = arith.constant 112 : i32
    %149 = tpu.dynamic_rotate %147 by %c112_i32 dim 1 : vector<8x128xf32>, i32 -> vector<8x128xf32>
    %150 = arith.select %18, %148, %149 : vector<8x128xi1>, vector<8x128xf32>
    %151 = arith.select %12, %150, %147 : vector<8x128xi1>, vector<8x128xf32>
    %c4_i32_20 = arith.constant 4 : i32
    %152 = tpu.dynamic_rotate %151 by %c4_i32_20 dim 1 : vector<8x128xf32>, i32 -> vector<8x128xf32>
    %c124_i32 = arith.constant 124 : i32
    %153 = tpu.dynamic_rotate %151 by %c124_i32 dim 1 : vector<8x128xf32>, i32 -> vector<8x128xf32>
    %154 = arith.select %30, %152, %153 : vector<8x128xi1>, vector<8x128xf32>
    %155 = arith.select %24, %154, %151 : vector<8x128xi1>, vector<8x128xf32>
    %c1_i32_21 = arith.constant 1 : i32
    %156 = tpu.dynamic_rotate %155 by %c1_i32_21 dim 1 : vector<8x128xf32>, i32 -> vector<8x128xf32>
    %c127_i32 = arith.constant 127 : i32
    %157 = tpu.dynamic_rotate %155 by %c127_i32 dim 1 : vector<8x128xf32>, i32 -> vector<8x128xf32>
    %158 = arith.select %42, %156, %157 : vector<8x128xi1>, vector<8x128xf32>
    %159 = arith.select %36, %158, %155 : vector<8x128xi1>, vector<8x128xf32>
    %c0_22 = arith.constant 0 : index
    %c0_23 = arith.constant 0 : index
    %160 = memref.load %arg1[%c0_22, %c0_23] : memref<3x7xf32, #tpu.memory_space<smem>>
    %c0_24 = arith.constant 0 : index
    %c0_25 = arith.constant 0 : index
    %161 = memref.load %arg2[%c0_24, %c0_25] : memref<3x7xf32, #tpu.memory_space<smem>>
    %c64_i32 = arith.constant 64 : i32
    %162 = tpu.dynamic_rotate %159 by %c64_i32 dim 1 : vector<8x128xf32>, i32 -> vector<8x128xf32>
    %c64_i32_26 = arith.constant 64 : i32
    %163 = tpu.dynamic_rotate %159 by %c64_i32_26 dim 1 : vector<8x128xf32>, i32 -> vector<8x128xf32>
    %cst_27 = arith.constant 0.000000e+00 : f32
    %164 = vector.broadcast %cst_27 : f32 to vector<8x128xf32>
    %165 = arith.subf %164, %163 : vector<8x128xf32>
    %166 = arith.select %6, %162, %165 : vector<8x128xi1>, vector<8x128xf32>
    %167 = vector.broadcast %160 : f32 to vector<8x128xf32>
    %168 = arith.mulf %167, %159 : vector<8x128xf32>
    %169 = vector.broadcast %161 : f32 to vector<8x128xf32>
    %170 = arith.mulf %169, %166 : vector<8x128xf32>
    %171 = arith.addf %168, %170 : vector<8x128xf32>
    %c0_28 = arith.constant 0 : index
    %c1 = arith.constant 1 : index
    %172 = memref.load %arg1[%c0_28, %c1] : memref<3x7xf32, #tpu.memory_space<smem>>
    %c0_29 = arith.constant 0 : index
    %c1_30 = arith.constant 1 : index
    %173 = memref.load %arg2[%c0_29, %c1_30] : memref<3x7xf32, #tpu.memory_space<smem>>
    %c32_i32_31 = arith.constant 32 : i32
    %174 = tpu.dynamic_rotate %171 by %c32_i32_31 dim 1 : vector<8x128xf32>, i32 -> vector<8x128xf32>
    %c96_i32_32 = arith.constant 96 : i32
    %175 = tpu.dynamic_rotate %171 by %c96_i32_32 dim 1 : vector<8x128xf32>, i32 -> vector<8x128xf32>
    %cst_33 = arith.constant 0.000000e+00 : f32
    %176 = vector.broadcast %cst_33 : f32 to vector<8x128xf32>
    %177 = arith.subf %176, %175 : vector<8x128xf32>
    %178 = arith.select %12, %174, %177 : vector<8x128xi1>, vector<8x128xf32>
    %179 = vector.broadcast %172 : f32 to vector<8x128xf32>
    %180 = arith.mulf %179, %171 : vector<8x128xf32>
    %181 = vector.broadcast %173 : f32 to vector<8x128xf32>
    %182 = arith.mulf %181, %178 : vector<8x128xf32>
    %183 = arith.addf %180, %182 : vector<8x128xf32>
    %c0_34 = arith.constant 0 : index
    %c2 = arith.constant 2 : index
    %184 = memref.load %arg1[%c0_34, %c2] : memref<3x7xf32, #tpu.memory_space<smem>>
    %c0_35 = arith.constant 0 : index
    %c2_36 = arith.constant 2 : index
    %185 = memref.load %arg2[%c0_35, %c2_36] : memref<3x7xf32, #tpu.memory_space<smem>>
    %c16_i32_37 = arith.constant 16 : i32
    %186 = tpu.dynamic_rotate %183 by %c16_i32_37 dim 1 : vector<8x128xf32>, i32 -> vector<8x128xf32>
    %c112_i32_38 = arith.constant 112 : i32
    %187 = tpu.dynamic_rotate %183 by %c112_i32_38 dim 1 : vector<8x128xf32>, i32 -> vector<8x128xf32>
    %cst_39 = arith.constant 0.000000e+00 : f32
    %188 = vector.broadcast %cst_39 : f32 to vector<8x128xf32>
    %189 = arith.subf %188, %187 : vector<8x128xf32>
    %190 = arith.select %18, %186, %189 : vector<8x128xi1>, vector<8x128xf32>
    %191 = vector.broadcast %184 : f32 to vector<8x128xf32>
    %192 = arith.mulf %191, %183 : vector<8x128xf32>
    %193 = vector.broadcast %185 : f32 to vector<8x128xf32>
    %194 = arith.mulf %193, %190 : vector<8x128xf32>
    %195 = arith.addf %192, %194 : vector<8x128xf32>
    %c0_40 = arith.constant 0 : index
    %c3 = arith.constant 3 : index
    %196 = memref.load %arg1[%c0_40, %c3] : memref<3x7xf32, #tpu.memory_space<smem>>
    %c0_41 = arith.constant 0 : index
    %c3_42 = arith.constant 3 : index
    %197 = memref.load %arg2[%c0_41, %c3_42] : memref<3x7xf32, #tpu.memory_space<smem>>
    %c8_i32_43 = arith.constant 8 : i32
    %198 = tpu.dynamic_rotate %195 by %c8_i32_43 dim 1 : vector<8x128xf32>, i32 -> vector<8x128xf32>
    %c120_i32_44 = arith.constant 120 : i32
    %199 = tpu.dynamic_rotate %195 by %c120_i32_44 dim 1 : vector<8x128xf32>, i32 -> vector<8x128xf32>
    %cst_45 = arith.constant 0.000000e+00 : f32
    %200 = vector.broadcast %cst_45 : f32 to vector<8x128xf32>
    %201 = arith.subf %200, %199 : vector<8x128xf32>
    %202 = arith.select %24, %198, %201 : vector<8x128xi1>, vector<8x128xf32>
    %203 = vector.broadcast %196 : f32 to vector<8x128xf32>
    %204 = arith.mulf %203, %195 : vector<8x128xf32>
    %205 = vector.broadcast %197 : f32 to vector<8x128xf32>
    %206 = arith.mulf %205, %202 : vector<8x128xf32>
    %207 = arith.addf %204, %206 : vector<8x128xf32>
    %c0_46 = arith.constant 0 : index
    %c4 = arith.constant 4 : index
    %208 = memref.load %arg1[%c0_46, %c4] : memref<3x7xf32, #tpu.memory_space<smem>>
    %c0_47 = arith.constant 0 : index
    %c4_48 = arith.constant 4 : index
    %209 = memref.load %arg2[%c0_47, %c4_48] : memref<3x7xf32, #tpu.memory_space<smem>>
    %c4_i32_49 = arith.constant 4 : i32
    %210 = tpu.dynamic_rotate %207 by %c4_i32_49 dim 1 : vector<8x128xf32>, i32 -> vector<8x128xf32>
    %c124_i32_50 = arith.constant 124 : i32
    %211 = tpu.dynamic_rotate %207 by %c124_i32_50 dim 1 : vector<8x128xf32>, i32 -> vector<8x128xf32>
    %cst_51 = arith.constant 0.000000e+00 : f32
    %212 = vector.broadcast %cst_51 : f32 to vector<8x128xf32>
    %213 = arith.subf %212, %211 : vector<8x128xf32>
    %214 = arith.select %30, %210, %213 : vector<8x128xi1>, vector<8x128xf32>
    %215 = vector.broadcast %208 : f32 to vector<8x128xf32>
    %216 = arith.mulf %215, %207 : vector<8x128xf32>
    %217 = vector.broadcast %209 : f32 to vector<8x128xf32>
    %218 = arith.mulf %217, %214 : vector<8x128xf32>
    %219 = arith.addf %216, %218 : vector<8x128xf32>
    %c0_52 = arith.constant 0 : index
    %c5 = arith.constant 5 : index
    %220 = memref.load %arg1[%c0_52, %c5] : memref<3x7xf32, #tpu.memory_space<smem>>
    %c0_53 = arith.constant 0 : index
    %c5_54 = arith.constant 5 : index
    %221 = memref.load %arg2[%c0_53, %c5_54] : memref<3x7xf32, #tpu.memory_space<smem>>
    %c2_i32_55 = arith.constant 2 : i32
    %222 = tpu.dynamic_rotate %219 by %c2_i32_55 dim 1 : vector<8x128xf32>, i32 -> vector<8x128xf32>
    %c126_i32_56 = arith.constant 126 : i32
    %223 = tpu.dynamic_rotate %219 by %c126_i32_56 dim 1 : vector<8x128xf32>, i32 -> vector<8x128xf32>
    %cst_57 = arith.constant 0.000000e+00 : f32
    %224 = vector.broadcast %cst_57 : f32 to vector<8x128xf32>
    %225 = arith.subf %224, %223 : vector<8x128xf32>
    %226 = arith.select %36, %222, %225 : vector<8x128xi1>, vector<8x128xf32>
    %227 = vector.broadcast %220 : f32 to vector<8x128xf32>
    %228 = arith.mulf %227, %219 : vector<8x128xf32>
    %229 = vector.broadcast %221 : f32 to vector<8x128xf32>
    %230 = arith.mulf %229, %226 : vector<8x128xf32>
    %231 = arith.addf %228, %230 : vector<8x128xf32>
    %c0_58 = arith.constant 0 : index
    %c6 = arith.constant 6 : index
    %232 = memref.load %arg1[%c0_58, %c6] : memref<3x7xf32, #tpu.memory_space<smem>>
    %c0_59 = arith.constant 0 : index
    %c6_60 = arith.constant 6 : index
    %233 = memref.load %arg2[%c0_59, %c6_60] : memref<3x7xf32, #tpu.memory_space<smem>>
    %c1_i32_61 = arith.constant 1 : i32
    %234 = tpu.dynamic_rotate %231 by %c1_i32_61 dim 1 : vector<8x128xf32>, i32 -> vector<8x128xf32>
    %c127_i32_62 = arith.constant 127 : i32
    %235 = tpu.dynamic_rotate %231 by %c127_i32_62 dim 1 : vector<8x128xf32>, i32 -> vector<8x128xf32>
    %cst_63 = arith.constant 0.000000e+00 : f32
    %236 = vector.broadcast %cst_63 : f32 to vector<8x128xf32>
    %237 = arith.subf %236, %235 : vector<8x128xf32>
    %238 = arith.select %42, %234, %237 : vector<8x128xi1>, vector<8x128xf32>
    %239 = vector.broadcast %232 : f32 to vector<8x128xf32>
    %240 = arith.mulf %239, %231 : vector<8x128xf32>
    %241 = vector.broadcast %233 : f32 to vector<8x128xf32>
    %242 = arith.mulf %241, %238 : vector<8x128xf32>
    %243 = arith.addf %240, %242 : vector<8x128xf32>
    %c32_i32_64 = arith.constant 32 : i32
    %244 = tpu.dynamic_rotate %243 by %c32_i32_64 dim 1 : vector<8x128xf32>, i32 -> vector<8x128xf32>
    %c96_i32_65 = arith.constant 96 : i32
    %245 = tpu.dynamic_rotate %243 by %c96_i32_65 dim 1 : vector<8x128xf32>, i32 -> vector<8x128xf32>
    %246 = arith.select %12, %244, %245 : vector<8x128xi1>, vector<8x128xf32>
    %247 = arith.select %6, %246, %243 : vector<8x128xi1>, vector<8x128xf32>
    %c8_i32_66 = arith.constant 8 : i32
    %248 = tpu.dynamic_rotate %247 by %c8_i32_66 dim 1 : vector<8x128xf32>, i32 -> vector<8x128xf32>
    %c120_i32_67 = arith.constant 120 : i32
    %249 = tpu.dynamic_rotate %247 by %c120_i32_67 dim 1 : vector<8x128xf32>, i32 -> vector<8x128xf32>
    %250 = arith.select %24, %248, %249 : vector<8x128xi1>, vector<8x128xf32>
    %251 = arith.select %18, %250, %247 : vector<8x128xi1>, vector<8x128xf32>
    %c2_i32_68 = arith.constant 2 : i32
    %252 = tpu.dynamic_rotate %251 by %c2_i32_68 dim 1 : vector<8x128xf32>, i32 -> vector<8x128xf32>
    %c126_i32_69 = arith.constant 126 : i32
    %253 = tpu.dynamic_rotate %251 by %c126_i32_69 dim 1 : vector<8x128xf32>, i32 -> vector<8x128xf32>
    %254 = arith.select %36, %252, %253 : vector<8x128xi1>, vector<8x128xf32>
    %255 = arith.select %30, %254, %251 : vector<8x128xi1>, vector<8x128xf32>
    %c16_i32_70 = arith.constant 16 : i32
    %256 = tpu.dynamic_rotate %255 by %c16_i32_70 dim 1 : vector<8x128xf32>, i32 -> vector<8x128xf32>
    %c112_i32_71 = arith.constant 112 : i32
    %257 = tpu.dynamic_rotate %255 by %c112_i32_71 dim 1 : vector<8x128xf32>, i32 -> vector<8x128xf32>
    %258 = arith.select %18, %256, %257 : vector<8x128xi1>, vector<8x128xf32>
    %259 = arith.select %12, %258, %255 : vector<8x128xi1>, vector<8x128xf32>
    %c4_i32_72 = arith.constant 4 : i32
    %260 = tpu.dynamic_rotate %259 by %c4_i32_72 dim 1 : vector<8x128xf32>, i32 -> vector<8x128xf32>
    %c124_i32_73 = arith.constant 124 : i32
    %261 = tpu.dynamic_rotate %259 by %c124_i32_73 dim 1 : vector<8x128xf32>, i32 -> vector<8x128xf32>
    %262 = arith.select %30, %260, %261 : vector<8x128xi1>, vector<8x128xf32>
    %263 = arith.select %24, %262, %259 : vector<8x128xi1>, vector<8x128xf32>
    %c1_i32_74 = arith.constant 1 : i32
    %264 = tpu.dynamic_rotate %263 by %c1_i32_74 dim 1 : vector<8x128xf32>, i32 -> vector<8x128xf32>
    %c127_i32_75 = arith.constant 127 : i32
    %265 = tpu.dynamic_rotate %263 by %c127_i32_75 dim 1 : vector<8x128xf32>, i32 -> vector<8x128xf32>
    %266 = arith.select %42, %264, %265 : vector<8x128xi1>, vector<8x128xf32>
    %267 = arith.select %36, %266, %263 : vector<8x128xi1>, vector<8x128xf32>
    %c1_76 = arith.constant 1 : index
    %c0_77 = arith.constant 0 : index
    %268 = memref.load %arg1[%c1_76, %c0_77] : memref<3x7xf32, #tpu.memory_space<smem>>
    %c1_78 = arith.constant 1 : index
    %c0_79 = arith.constant 0 : index
    %269 = memref.load %arg2[%c1_78, %c0_79] : memref<3x7xf32, #tpu.memory_space<smem>>
    %c64_i32_80 = arith.constant 64 : i32
    %270 = tpu.dynamic_rotate %267 by %c64_i32_80 dim 1 : vector<8x128xf32>, i32 -> vector<8x128xf32>
    %c64_i32_81 = arith.constant 64 : i32
    %271 = tpu.dynamic_rotate %267 by %c64_i32_81 dim 1 : vector<8x128xf32>, i32 -> vector<8x128xf32>
    %cst_82 = arith.constant 0.000000e+00 : f32
    %272 = vector.broadcast %cst_82 : f32 to vector<8x128xf32>
    %273 = arith.subf %272, %271 : vector<8x128xf32>
    %274 = arith.select %6, %270, %273 : vector<8x128xi1>, vector<8x128xf32>
    %275 = vector.broadcast %268 : f32 to vector<8x128xf32>
    %276 = arith.mulf %275, %267 : vector<8x128xf32>
    %277 = vector.broadcast %269 : f32 to vector<8x128xf32>
    %278 = arith.mulf %277, %274 : vector<8x128xf32>
    %279 = arith.addf %276, %278 : vector<8x128xf32>
    %c1_83 = arith.constant 1 : index
    %c1_84 = arith.constant 1 : index
    %280 = memref.load %arg1[%c1_83, %c1_84] : memref<3x7xf32, #tpu.memory_space<smem>>
    %c1_85 = arith.constant 1 : index
    %c1_86 = arith.constant 1 : index
    %281 = memref.load %arg2[%c1_85, %c1_86] : memref<3x7xf32, #tpu.memory_space<smem>>
    %c32_i32_87 = arith.constant 32 : i32
    %282 = tpu.dynamic_rotate %279 by %c32_i32_87 dim 1 : vector<8x128xf32>, i32 -> vector<8x128xf32>
    %c96_i32_88 = arith.constant 96 : i32
    %283 = tpu.dynamic_rotate %279 by %c96_i32_88 dim 1 : vector<8x128xf32>, i32 -> vector<8x128xf32>
    %cst_89 = arith.constant 0.000000e+00 : f32
    %284 = vector.broadcast %cst_89 : f32 to vector<8x128xf32>
    %285 = arith.subf %284, %283 : vector<8x128xf32>
    %286 = arith.select %12, %282, %285 : vector<8x128xi1>, vector<8x128xf32>
    %287 = vector.broadcast %280 : f32 to vector<8x128xf32>
    %288 = arith.mulf %287, %279 : vector<8x128xf32>
    %289 = vector.broadcast %281 : f32 to vector<8x128xf32>
    %290 = arith.mulf %289, %286 : vector<8x128xf32>
    %291 = arith.addf %288, %290 : vector<8x128xf32>
    %c1_90 = arith.constant 1 : index
    %c2_91 = arith.constant 2 : index
    %292 = memref.load %arg1[%c1_90, %c2_91] : memref<3x7xf32, #tpu.memory_space<smem>>
    %c1_92 = arith.constant 1 : index
    %c2_93 = arith.constant 2 : index
    %293 = memref.load %arg2[%c1_92, %c2_93] : memref<3x7xf32, #tpu.memory_space<smem>>
    %c16_i32_94 = arith.constant 16 : i32
    %294 = tpu.dynamic_rotate %291 by %c16_i32_94 dim 1 : vector<8x128xf32>, i32 -> vector<8x128xf32>
    %c112_i32_95 = arith.constant 112 : i32
    %295 = tpu.dynamic_rotate %291 by %c112_i32_95 dim 1 : vector<8x128xf32>, i32 -> vector<8x128xf32>
    %cst_96 = arith.constant 0.000000e+00 : f32
    %296 = vector.broadcast %cst_96 : f32 to vector<8x128xf32>
    %297 = arith.subf %296, %295 : vector<8x128xf32>
    %298 = arith.select %18, %294, %297 : vector<8x128xi1>, vector<8x128xf32>
    %299 = vector.broadcast %292 : f32 to vector<8x128xf32>
    %300 = arith.mulf %299, %291 : vector<8x128xf32>
    %301 = vector.broadcast %293 : f32 to vector<8x128xf32>
    %302 = arith.mulf %301, %298 : vector<8x128xf32>
    %303 = arith.addf %300, %302 : vector<8x128xf32>
    %c1_97 = arith.constant 1 : index
    %c3_98 = arith.constant 3 : index
    %304 = memref.load %arg1[%c1_97, %c3_98] : memref<3x7xf32, #tpu.memory_space<smem>>
    %c1_99 = arith.constant 1 : index
    %c3_100 = arith.constant 3 : index
    %305 = memref.load %arg2[%c1_99, %c3_100] : memref<3x7xf32, #tpu.memory_space<smem>>
    %c8_i32_101 = arith.constant 8 : i32
    %306 = tpu.dynamic_rotate %303 by %c8_i32_101 dim 1 : vector<8x128xf32>, i32 -> vector<8x128xf32>
    %c120_i32_102 = arith.constant 120 : i32
    %307 = tpu.dynamic_rotate %303 by %c120_i32_102 dim 1 : vector<8x128xf32>, i32 -> vector<8x128xf32>
    %cst_103 = arith.constant 0.000000e+00 : f32
    %308 = vector.broadcast %cst_103 : f32 to vector<8x128xf32>
    %309 = arith.subf %308, %307 : vector<8x128xf32>
    %310 = arith.select %24, %306, %309 : vector<8x128xi1>, vector<8x128xf32>
    %311 = vector.broadcast %304 : f32 to vector<8x128xf32>
    %312 = arith.mulf %311, %303 : vector<8x128xf32>
    %313 = vector.broadcast %305 : f32 to vector<8x128xf32>
    %314 = arith.mulf %313, %310 : vector<8x128xf32>
    %315 = arith.addf %312, %314 : vector<8x128xf32>
    %c1_104 = arith.constant 1 : index
    %c4_105 = arith.constant 4 : index
    %316 = memref.load %arg1[%c1_104, %c4_105] : memref<3x7xf32, #tpu.memory_space<smem>>
    %c1_106 = arith.constant 1 : index
    %c4_107 = arith.constant 4 : index
    %317 = memref.load %arg2[%c1_106, %c4_107] : memref<3x7xf32, #tpu.memory_space<smem>>
    %c4_i32_108 = arith.constant 4 : i32
    %318 = tpu.dynamic_rotate %315 by %c4_i32_108 dim 1 : vector<8x128xf32>, i32 -> vector<8x128xf32>
    %c124_i32_109 = arith.constant 124 : i32
    %319 = tpu.dynamic_rotate %315 by %c124_i32_109 dim 1 : vector<8x128xf32>, i32 -> vector<8x128xf32>
    %cst_110 = arith.constant 0.000000e+00 : f32
    %320 = vector.broadcast %cst_110 : f32 to vector<8x128xf32>
    %321 = arith.subf %320, %319 : vector<8x128xf32>
    %322 = arith.select %30, %318, %321 : vector<8x128xi1>, vector<8x128xf32>
    %323 = vector.broadcast %316 : f32 to vector<8x128xf32>
    %324 = arith.mulf %323, %315 : vector<8x128xf32>
    %325 = vector.broadcast %317 : f32 to vector<8x128xf32>
    %326 = arith.mulf %325, %322 : vector<8x128xf32>
    %327 = arith.addf %324, %326 : vector<8x128xf32>
    %c1_111 = arith.constant 1 : index
    %c5_112 = arith.constant 5 : index
    %328 = memref.load %arg1[%c1_111, %c5_112] : memref<3x7xf32, #tpu.memory_space<smem>>
    %c1_113 = arith.constant 1 : index
    %c5_114 = arith.constant 5 : index
    %329 = memref.load %arg2[%c1_113, %c5_114] : memref<3x7xf32, #tpu.memory_space<smem>>
    %c2_i32_115 = arith.constant 2 : i32
    %330 = tpu.dynamic_rotate %327 by %c2_i32_115 dim 1 : vector<8x128xf32>, i32 -> vector<8x128xf32>
    %c126_i32_116 = arith.constant 126 : i32
    %331 = tpu.dynamic_rotate %327 by %c126_i32_116 dim 1 : vector<8x128xf32>, i32 -> vector<8x128xf32>
    %cst_117 = arith.constant 0.000000e+00 : f32
    %332 = vector.broadcast %cst_117 : f32 to vector<8x128xf32>
    %333 = arith.subf %332, %331 : vector<8x128xf32>
    %334 = arith.select %36, %330, %333 : vector<8x128xi1>, vector<8x128xf32>
    %335 = vector.broadcast %328 : f32 to vector<8x128xf32>
    %336 = arith.mulf %335, %327 : vector<8x128xf32>
    %337 = vector.broadcast %329 : f32 to vector<8x128xf32>
    %338 = arith.mulf %337, %334 : vector<8x128xf32>
    %339 = arith.addf %336, %338 : vector<8x128xf32>
    %c1_118 = arith.constant 1 : index
    %c6_119 = arith.constant 6 : index
    %340 = memref.load %arg1[%c1_118, %c6_119] : memref<3x7xf32, #tpu.memory_space<smem>>
    %c1_120 = arith.constant 1 : index
    %c6_121 = arith.constant 6 : index
    %341 = memref.load %arg2[%c1_120, %c6_121] : memref<3x7xf32, #tpu.memory_space<smem>>
    %c1_i32_122 = arith.constant 1 : i32
    %342 = tpu.dynamic_rotate %339 by %c1_i32_122 dim 1 : vector<8x128xf32>, i32 -> vector<8x128xf32>
    %c127_i32_123 = arith.constant 127 : i32
    %343 = tpu.dynamic_rotate %339 by %c127_i32_123 dim 1 : vector<8x128xf32>, i32 -> vector<8x128xf32>
    %cst_124 = arith.constant 0.000000e+00 : f32
    %344 = vector.broadcast %cst_124 : f32 to vector<8x128xf32>
    %345 = arith.subf %344, %343 : vector<8x128xf32>
    %346 = arith.select %42, %342, %345 : vector<8x128xi1>, vector<8x128xf32>
    %347 = vector.broadcast %340 : f32 to vector<8x128xf32>
    %348 = arith.mulf %347, %339 : vector<8x128xf32>
    %349 = vector.broadcast %341 : f32 to vector<8x128xf32>
    %350 = arith.mulf %349, %346 : vector<8x128xf32>
    %351 = arith.addf %348, %350 : vector<8x128xf32>
    %c32_i32_125 = arith.constant 32 : i32
    %352 = tpu.dynamic_rotate %351 by %c32_i32_125 dim 1 : vector<8x128xf32>, i32 -> vector<8x128xf32>
    %c96_i32_126 = arith.constant 96 : i32
    %353 = tpu.dynamic_rotate %351 by %c96_i32_126 dim 1 : vector<8x128xf32>, i32 -> vector<8x128xf32>
    %354 = arith.select %12, %352, %353 : vector<8x128xi1>, vector<8x128xf32>
    %355 = arith.select %6, %354, %351 : vector<8x128xi1>, vector<8x128xf32>
    %c8_i32_127 = arith.constant 8 : i32
    %356 = tpu.dynamic_rotate %355 by %c8_i32_127 dim 1 : vector<8x128xf32>, i32 -> vector<8x128xf32>
    %c120_i32_128 = arith.constant 120 : i32
    %357 = tpu.dynamic_rotate %355 by %c120_i32_128 dim 1 : vector<8x128xf32>, i32 -> vector<8x128xf32>
    %358 = arith.select %24, %356, %357 : vector<8x128xi1>, vector<8x128xf32>
    %359 = arith.select %18, %358, %355 : vector<8x128xi1>, vector<8x128xf32>
    %c2_i32_129 = arith.constant 2 : i32
    %360 = tpu.dynamic_rotate %359 by %c2_i32_129 dim 1 : vector<8x128xf32>, i32 -> vector<8x128xf32>
    %c126_i32_130 = arith.constant 126 : i32
    %361 = tpu.dynamic_rotate %359 by %c126_i32_130 dim 1 : vector<8x128xf32>, i32 -> vector<8x128xf32>
    %362 = arith.select %36, %360, %361 : vector<8x128xi1>, vector<8x128xf32>
    %363 = arith.select %30, %362, %359 : vector<8x128xi1>, vector<8x128xf32>
    %c16_i32_131 = arith.constant 16 : i32
    %364 = tpu.dynamic_rotate %363 by %c16_i32_131 dim 1 : vector<8x128xf32>, i32 -> vector<8x128xf32>
    %c112_i32_132 = arith.constant 112 : i32
    %365 = tpu.dynamic_rotate %363 by %c112_i32_132 dim 1 : vector<8x128xf32>, i32 -> vector<8x128xf32>
    %366 = arith.select %18, %364, %365 : vector<8x128xi1>, vector<8x128xf32>
    %367 = arith.select %12, %366, %363 : vector<8x128xi1>, vector<8x128xf32>
    %c4_i32_133 = arith.constant 4 : i32
    %368 = tpu.dynamic_rotate %367 by %c4_i32_133 dim 1 : vector<8x128xf32>, i32 -> vector<8x128xf32>
    %c124_i32_134 = arith.constant 124 : i32
    %369 = tpu.dynamic_rotate %367 by %c124_i32_134 dim 1 : vector<8x128xf32>, i32 -> vector<8x128xf32>
    %370 = arith.select %30, %368, %369 : vector<8x128xi1>, vector<8x128xf32>
    %371 = arith.select %24, %370, %367 : vector<8x128xi1>, vector<8x128xf32>
    %c1_i32_135 = arith.constant 1 : i32
    %372 = tpu.dynamic_rotate %371 by %c1_i32_135 dim 1 : vector<8x128xf32>, i32 -> vector<8x128xf32>
    %c127_i32_136 = arith.constant 127 : i32
    %373 = tpu.dynamic_rotate %371 by %c127_i32_136 dim 1 : vector<8x128xf32>, i32 -> vector<8x128xf32>
    %374 = arith.select %42, %372, %373 : vector<8x128xi1>, vector<8x128xf32>
    %375 = arith.select %36, %374, %371 : vector<8x128xi1>, vector<8x128xf32>
    %c2_137 = arith.constant 2 : index
    %c0_138 = arith.constant 0 : index
    %376 = memref.load %arg1[%c2_137, %c0_138] : memref<3x7xf32, #tpu.memory_space<smem>>
    %c2_139 = arith.constant 2 : index
    %c0_140 = arith.constant 0 : index
    %377 = memref.load %arg2[%c2_139, %c0_140] : memref<3x7xf32, #tpu.memory_space<smem>>
    %c64_i32_141 = arith.constant 64 : i32
    %378 = tpu.dynamic_rotate %375 by %c64_i32_141 dim 1 : vector<8x128xf32>, i32 -> vector<8x128xf32>
    %c64_i32_142 = arith.constant 64 : i32
    %379 = tpu.dynamic_rotate %375 by %c64_i32_142 dim 1 : vector<8x128xf32>, i32 -> vector<8x128xf32>
    %cst_143 = arith.constant 0.000000e+00 : f32
    %380 = vector.broadcast %cst_143 : f32 to vector<8x128xf32>
    %381 = arith.subf %380, %379 : vector<8x128xf32>
    %382 = arith.select %6, %378, %381 : vector<8x128xi1>, vector<8x128xf32>
    %383 = vector.broadcast %376 : f32 to vector<8x128xf32>
    %384 = arith.mulf %383, %375 : vector<8x128xf32>
    %385 = vector.broadcast %377 : f32 to vector<8x128xf32>
    %386 = arith.mulf %385, %382 : vector<8x128xf32>
    %387 = arith.addf %384, %386 : vector<8x128xf32>
    %c2_144 = arith.constant 2 : index
    %c1_145 = arith.constant 1 : index
    %388 = memref.load %arg1[%c2_144, %c1_145] : memref<3x7xf32, #tpu.memory_space<smem>>
    %c2_146 = arith.constant 2 : index
    %c1_147 = arith.constant 1 : index
    %389 = memref.load %arg2[%c2_146, %c1_147] : memref<3x7xf32, #tpu.memory_space<smem>>
    %c32_i32_148 = arith.constant 32 : i32
    %390 = tpu.dynamic_rotate %387 by %c32_i32_148 dim 1 : vector<8x128xf32>, i32 -> vector<8x128xf32>
    %c96_i32_149 = arith.constant 96 : i32
    %391 = tpu.dynamic_rotate %387 by %c96_i32_149 dim 1 : vector<8x128xf32>, i32 -> vector<8x128xf32>
    %cst_150 = arith.constant 0.000000e+00 : f32
    %392 = vector.broadcast %cst_150 : f32 to vector<8x128xf32>
    %393 = arith.subf %392, %391 : vector<8x128xf32>
    %394 = arith.select %12, %390, %393 : vector<8x128xi1>, vector<8x128xf32>
    %395 = vector.broadcast %388 : f32 to vector<8x128xf32>
    %396 = arith.mulf %395, %387 : vector<8x128xf32>
    %397 = vector.broadcast %389 : f32 to vector<8x128xf32>
    %398 = arith.mulf %397, %394 : vector<8x128xf32>
    %399 = arith.addf %396, %398 : vector<8x128xf32>
    %c2_151 = arith.constant 2 : index
    %c2_152 = arith.constant 2 : index
    %400 = memref.load %arg1[%c2_151, %c2_152] : memref<3x7xf32, #tpu.memory_space<smem>>
    %c2_153 = arith.constant 2 : index
    %c2_154 = arith.constant 2 : index
    %401 = memref.load %arg2[%c2_153, %c2_154] : memref<3x7xf32, #tpu.memory_space<smem>>
    %c16_i32_155 = arith.constant 16 : i32
    %402 = tpu.dynamic_rotate %399 by %c16_i32_155 dim 1 : vector<8x128xf32>, i32 -> vector<8x128xf32>
    %c112_i32_156 = arith.constant 112 : i32
    %403 = tpu.dynamic_rotate %399 by %c112_i32_156 dim 1 : vector<8x128xf32>, i32 -> vector<8x128xf32>
    %cst_157 = arith.constant 0.000000e+00 : f32
    %404 = vector.broadcast %cst_157 : f32 to vector<8x128xf32>
    %405 = arith.subf %404, %403 : vector<8x128xf32>
    %406 = arith.select %18, %402, %405 : vector<8x128xi1>, vector<8x128xf32>
    %407 = vector.broadcast %400 : f32 to vector<8x128xf32>
    %408 = arith.mulf %407, %399 : vector<8x128xf32>
    %409 = vector.broadcast %401 : f32 to vector<8x128xf32>
    %410 = arith.mulf %409, %406 : vector<8x128xf32>
    %411 = arith.addf %408, %410 : vector<8x128xf32>
    %c2_158 = arith.constant 2 : index
    %c3_159 = arith.constant 3 : index
    %412 = memref.load %arg1[%c2_158, %c3_159] : memref<3x7xf32, #tpu.memory_space<smem>>
    %c2_160 = arith.constant 2 : index
    %c3_161 = arith.constant 3 : index
    %413 = memref.load %arg2[%c2_160, %c3_161] : memref<3x7xf32, #tpu.memory_space<smem>>
    %c8_i32_162 = arith.constant 8 : i32
    %414 = tpu.dynamic_rotate %411 by %c8_i32_162 dim 1 : vector<8x128xf32>, i32 -> vector<8x128xf32>
    %c120_i32_163 = arith.constant 120 : i32
    %415 = tpu.dynamic_rotate %411 by %c120_i32_163 dim 1 : vector<8x128xf32>, i32 -> vector<8x128xf32>
    %cst_164 = arith.constant 0.000000e+00 : f32
    %416 = vector.broadcast %cst_164 : f32 to vector<8x128xf32>
    %417 = arith.subf %416, %415 : vector<8x128xf32>
    %418 = arith.select %24, %414, %417 : vector<8x128xi1>, vector<8x128xf32>
    %419 = vector.broadcast %412 : f32 to vector<8x128xf32>
    %420 = arith.mulf %419, %411 : vector<8x128xf32>
    %421 = vector.broadcast %413 : f32 to vector<8x128xf32>
    %422 = arith.mulf %421, %418 : vector<8x128xf32>
    %423 = arith.addf %420, %422 : vector<8x128xf32>
    %c2_165 = arith.constant 2 : index
    %c4_166 = arith.constant 4 : index
    %424 = memref.load %arg1[%c2_165, %c4_166] : memref<3x7xf32, #tpu.memory_space<smem>>
    %c2_167 = arith.constant 2 : index
    %c4_168 = arith.constant 4 : index
    %425 = memref.load %arg2[%c2_167, %c4_168] : memref<3x7xf32, #tpu.memory_space<smem>>
    %c4_i32_169 = arith.constant 4 : i32
    %426 = tpu.dynamic_rotate %423 by %c4_i32_169 dim 1 : vector<8x128xf32>, i32 -> vector<8x128xf32>
    %c124_i32_170 = arith.constant 124 : i32
    %427 = tpu.dynamic_rotate %423 by %c124_i32_170 dim 1 : vector<8x128xf32>, i32 -> vector<8x128xf32>
    %cst_171 = arith.constant 0.000000e+00 : f32
    %428 = vector.broadcast %cst_171 : f32 to vector<8x128xf32>
    %429 = arith.subf %428, %427 : vector<8x128xf32>
    %430 = arith.select %30, %426, %429 : vector<8x128xi1>, vector<8x128xf32>
    %431 = vector.broadcast %424 : f32 to vector<8x128xf32>
    %432 = arith.mulf %431, %423 : vector<8x128xf32>
    %433 = vector.broadcast %425 : f32 to vector<8x128xf32>
    %434 = arith.mulf %433, %430 : vector<8x128xf32>
    %435 = arith.addf %432, %434 : vector<8x128xf32>
    %c2_172 = arith.constant 2 : index
    %c5_173 = arith.constant 5 : index
    %436 = memref.load %arg1[%c2_172, %c5_173] : memref<3x7xf32, #tpu.memory_space<smem>>
    %c2_174 = arith.constant 2 : index
    %c5_175 = arith.constant 5 : index
    %437 = memref.load %arg2[%c2_174, %c5_175] : memref<3x7xf32, #tpu.memory_space<smem>>
    %c2_i32_176 = arith.constant 2 : i32
    %438 = tpu.dynamic_rotate %435 by %c2_i32_176 dim 1 : vector<8x128xf32>, i32 -> vector<8x128xf32>
    %c126_i32_177 = arith.constant 126 : i32
    %439 = tpu.dynamic_rotate %435 by %c126_i32_177 dim 1 : vector<8x128xf32>, i32 -> vector<8x128xf32>
    %cst_178 = arith.constant 0.000000e+00 : f32
    %440 = vector.broadcast %cst_178 : f32 to vector<8x128xf32>
    %441 = arith.subf %440, %439 : vector<8x128xf32>
    %442 = arith.select %36, %438, %441 : vector<8x128xi1>, vector<8x128xf32>
    %443 = vector.broadcast %436 : f32 to vector<8x128xf32>
    %444 = arith.mulf %443, %435 : vector<8x128xf32>
    %445 = vector.broadcast %437 : f32 to vector<8x128xf32>
    %446 = arith.mulf %445, %442 : vector<8x128xf32>
    %447 = arith.addf %444, %446 : vector<8x128xf32>
    %c2_179 = arith.constant 2 : index
    %c6_180 = arith.constant 6 : index
    %448 = memref.load %arg1[%c2_179, %c6_180] : memref<3x7xf32, #tpu.memory_space<smem>>
    %c2_181 = arith.constant 2 : index
    %c6_182 = arith.constant 6 : index
    %449 = memref.load %arg2[%c2_181, %c6_182] : memref<3x7xf32, #tpu.memory_space<smem>>
    %c1_i32_183 = arith.constant 1 : i32
    %450 = tpu.dynamic_rotate %447 by %c1_i32_183 dim 1 : vector<8x128xf32>, i32 -> vector<8x128xf32>
    %c127_i32_184 = arith.constant 127 : i32
    %451 = tpu.dynamic_rotate %447 by %c127_i32_184 dim 1 : vector<8x128xf32>, i32 -> vector<8x128xf32>
    %cst_185 = arith.constant 0.000000e+00 : f32
    %452 = vector.broadcast %cst_185 : f32 to vector<8x128xf32>
    %453 = arith.subf %452, %451 : vector<8x128xf32>
    %454 = arith.select %42, %450, %453 : vector<8x128xi1>, vector<8x128xf32>
    %455 = vector.broadcast %448 : f32 to vector<8x128xf32>
    %456 = arith.mulf %455, %447 : vector<8x128xf32>
    %457 = vector.broadcast %449 : f32 to vector<8x128xf32>
    %458 = arith.mulf %457, %454 : vector<8x128xf32>
    %459 = arith.addf %456, %458 : vector<8x128xf32>
    %460 = arith.mulf %459, %459 : vector<8x128xf32>
    %461 = vector.shape_cast %460 : vector<8x128xf32> to vector<8x1x128xf32>
    %c0_186 = arith.constant 0 : index
    %c0_187 = arith.constant 0 : index
    %462 = vector.load %arg3[%c0_186, %c0_187] : memref<4x128xf32, #tpu.memory_space<vmem>>, vector<4x128xf32>
    %463 = vector.shape_cast %462 : vector<4x128xf32> to vector<1x4x128xf32>
    %464 = vector.broadcast %461 : vector<8x1x128xf32> to vector<8x4x128xf32>
    %465 = vector.broadcast %463 : vector<1x4x128xf32> to vector<8x4x128xf32>
    %466 = arith.mulf %464, %465 : vector<8x4x128xf32>
    %cst_188 = arith.constant dense<0.000000e+00> : vector<8x4xf32>
    %467 = vector.multi_reduction <add>, %466, %cst_188 [2] : vector<8x4x128xf32> to vector<8x4xf32>
    %c0_189 = arith.constant 0 : index
    %c0_190 = arith.constant 0 : index
    %468 = vector.load %arg4[%c0_189, %c0_190] : memref<8x4xf32, #tpu.memory_space<vmem>>, vector<8x4xf32>
    tpu.vector_store %arg4[%c0_189, %c0_190], %467 {strides = array<i32>} : memref<8x4xf32, #tpu.memory_space<vmem>>, vector<8x4xf32>,
    return
  }
}

</mosaic_0001>

<bundles_post_ra>
// kernel: torch_vqc_forward.1
= control target key start
LH: loop header
LB: loop body
LE: loop exit
PB: predicated region body
PF: predicated region fallthrough
CT: control target
= control target key end

     0   :  { %9 = vsyncpa [#allocation3], 0  ;;  %s1369_s0 = inlined_call_operand.vmem [shape: f32[8,7], index: 0, kind: input, shape index: {}]   ;;  %s1370_s1 = inlined_call_operand.vmem [shape: f32[3,7], index: 1, kind: input, shape index: {}]   ;;  %s1371_s2 = inlined_call_operand.vmem [shape: f32[3,7], index: 2, kind: input, shape index: {}]   ;;  %s1372_s3 = inlined_call_operand.vmem [shape: f32[4,128], index: 3, kind: input, shape index: {}]   ;;  %s1373_s4 = inlined_call_operand.vmem [shape: f32[8,4], index: 4, kind: output, shape index: {}]  }
   0x1   :  { %s19_s17 = sshll.u32 %s1370_s1, 4  ;;  %s20_s17 = int_to_ptr.vmem [resolvable:$true] %s19_s17 }
   0x2   :  { %10 = vsyncpa [#allocation5], 0  ;;  %s29_s20 = sshll.u32 %s1371_s2, 4  ;;  %s1006_s21 = scalar_lea.vmem %s20_s17, 64  ;;  %s30_s20 = int_to_ptr.vmem [resolvable:$true] %s29_s20 }
   0x3   :  { %p1007_p0 = scmp.ne.s32.totalorder %s20_s17, %s1006_s21  ;;  %p1011_p1 = scmp.lt.s32.totalorder %s20_s17, %s20_s17 }
   0x4   :  { %p1012_p2 = scmp.lt.s32.totalorder %s1006_s21, %s1006_s21 }
   0x6   :  { %p1013_p3 = por %p1012_p2, %p1011_p1 }
   0x8   :  { %p1014_p4 = pnand %p1013_p3, %p1007_p0 }
   0xa   :  { %1017 = shalt.err (!%p1014_p4)
}
   0xb   :  { %s1034_s22 = smov [#allocation2]   ;;  %s1018_s23 = scalar_lea.vmem %s30_s20, 64 }
   0xc   :  { %22 = dma.vmem_to_smem %s20_s17, 64, %s1034_s22, [#allocation3]  }
   0xd   :  { %p1019_p5 = scmp.ne.s32.totalorder %s30_s20, %s1018_s23  ;;  %p1023_p6 = scmp.lt.s32.totalorder %s30_s20, %s30_s20 }
   0xe   :  { %p1024_p7 = scmp.lt.s32.totalorder %s1018_s23, %s1018_s23 }
  0x10   :  { %p1025_p8 = por %p1024_p7, %p1023_p6 }
  0x12   :  { %p1026_p9 = pnand %p1025_p8, %p1019_p5 }
  0x14   :  { %1029 = shalt.err (!%p1026_p9)
}
  0x15   :  { %s1035_s1 = smov [#allocation4]  }
  0x16   :  { %32 = dma.vmem_to_smem %s30_s20, 64, %s1035_s1, [#allocation5]  }
  0x17   :  { %1030 = dma.done.wait [#allocation3], 64  }
  0x18   :  { %1031 = vsyncadd [#allocation3], 4294967232 }
  0x19   :  { %1032 = dma.done.wait [#allocation5], 64  }
  0x1a   :  { %1033 = vsyncadd [#allocation5], 4294967232 }
  0x1b   :  { %41 = sfence }
  0x1c   :  { %v64_v0 = vld [vmem:[%s1369_s0] sm:$0xff]  ;;  %v1036_v1 = vmov 1   ;;  %v1037_v2 = vmov 0   ;;  %v1038_v15 = vmov 683565275   ;;  %s1049_s0 = smov 32  }
  0x1d   :  { %992 = vset.pattern.permute.xlu1 %v1036_v1  ;;  %991 = vset.pattern.permute.xlu0 %v1037_v2  ;;  %v1097_v3 = vmul.f32 0.5, %v64_v0  ;;  %v1039_v17 = vmov 2475754826   ;;  %v1040_v19 = vmov 2131351028   ;;  %s1050_s25 = smov 96  }
  0x1e   :  { %v1041_v21 = vmov 2102212464   ;;  %v1042_v23 = vmov 920167782   ;;  %v1043_v30 = vmov 1326507024  }
  0x1f   :  { %v69_v4 = vand.u32 2139095040, %v1097_v3  ;;  %v66_v6 = vand.u32 2147483647, %v1097_v3  ;;  %vm68_vm7 = vcmp.lt.s32.totalorder %v1097_v3, 0  ;;  %vm158_vm15 = vweird.f32 %v1097_v3  ;;  %s1051_s26 = smov 120   ;;  %s1052_s27 = smov 8  }
  0x20   :  { %s1053_s28 = smov 126   ;;  %s1054_s29 = smov 2  }
  0x21   :  { %v70_v5 = vshrl.u32 %v69_v4, 23  ;;  %v73_v9 = vand.u32 8388607, %v66_v6  ;;  %vm67_vm8 = vcmp.le.f32.partialorder %v66_v6, 0.7853982  ;;  %s1055_s30 = smov 112  }
  0x22   :  { %s1056_s5 = smov 16   ;;  %s1057_s6 = smov 124  }
  0x23   :  { %v910_v7 = vadd.s32 4294967169, %v70_v5  ;;  %v74_v12 = vor.u32 8388608, %v73_v9  ;;  %s1058_s7 = smov 4   ;;  %s1059_s8 = smov 127  }
  0x24   :  { %s1060_s9 = smov 1   ;;  %s1061_s10 = smov 64  }
  0x25   :  { %v76_v8 = vadd.s32 1, %v910_v7  ;;  %v114_v32 = vshll.u32 %v74_v12, 8  ;;  %s383_s11 = sld [smem:[#allocation2]] }
  0x26   :  { %s384_s12 = sld [smem:[#allocation4]] }
  0x27   :  { %vm77_vm0 = vcmp.gt.s32.totalorder %v76_v8, 0  ;;  %s918_s13 = sld [smem:[#allocation2 + $0x1]] }
  0x28   :  { %v78_v10 = vsel %vm77_vm0, %v76_v8, 0  ;;  %s919_s14 = sld [smem:[#allocation4 + $0x1]] }
  0x29   :  { %v80_v11 = vand.u32 31, %v78_v10  ;;  %v79_v13 = vshrl.u32 %v78_v10, 5  ;;  %s920_s15 = sld [smem:[#allocation2 + $0x2]] }
  0x2a   :  { %s921_s16 = sld [smem:[#allocation4 + $0x2]] }
  0x2b   :  { %v81_v14 = vsub.s32 32, %v80_v11  ;;  %v83_v16 = vshll.u32 %v1038_v15, %v80_v11  ;;  %v86_v18 = vshll.u32 %v1039_v17, %v80_v11  ;;  %v89_v20 = vshll.u32 %v1040_v19, %v80_v11  ;;  %s922_s17 = sld [smem:[#allocation2 + $0x3]] }
  0x2c   :  { %v92_v22 = vshll.u32 %v1041_v21, %v80_v11  ;;  %v95_v24 = vshll.u32 %v1042_v23, %v80_v11  ;;  %vm98_vm1 = vcmp.lt.s32.totalorder %v79_v13, 1  ;;  %vm101_vm2 = vcmp.lt.s32.totalorder %v79_v13, 4  ;;  %s923_s18 = sld [smem:[#allocation4 + $0x3]] }
  0x2d   :  { %v82_v25 = vshrl.u32 %v1038_v15, %v81_v14  ;;  %v84_v26 = vshrl.u32 %v1039_v17, %v81_v14  ;;  %v87_v27 = vshrl.u32 %v1040_v19, %v81_v14  ;;  %v90_v28 = vshrl.u32 %v1041_v21, %v81_v14  ;;  %s924_s19 = sld [smem:[#allocation2 + $0x4]] }
  0x2e   :  { %v93_v29 = vshrl.u32 %v1042_v23, %v81_v14  ;;  %v96_v31 = vshrl.u32 %v1043_v30, %v81_v14  ;;  %vm99_vm3 = vcmp.lt.s32.totalorder %v79_v13, 2  ;;  %vm100_vm4 = vcmp.lt.s32.totalorder %v79_v13, 3  ;;  %s925_s20 = sld [smem:[#allocation4 + $0x4]] }
  0x2f   :  { %v85_v33 = vor.u32 %v84_v26, %v83_v16  ;;  %v88_v34 = vor.u32 %v87_v27, %v86_v18  ;;  %v91_v35 = vor.u32 %v90_v28, %v89_v20  ;;  %s926_s21 = sld [smem:[#allocation2 + $0x5]] }
  0x30   :  { %v94_v36 = vor.u32 %v93_v29, %v92_v22  ;;  %v97_v37 = vor.u32 %v96_v31, %v95_v24  ;;  %s927_s22 = sld [smem:[#allocation4 + $0x5]] }
  0x31   :  { %v102_v38 = vsel %vm98_vm1, %v82_v25, %v85_v33  ;;  %v103_v39 = vsel %vm101_vm2, %v91_v35, 2102212464  ;;  %v106_v40 = vsel %vm98_vm1, %v85_v33, %v88_v34  ;;  %v110_v41 = vsel %vm98_vm1, %v88_v34, %v91_v35  ;;  %s928_s23 = sld [smem:[#allocation2 + $0x6]] }
  0x32   :  { %v104_v42 = vsel %vm100_vm4, %v88_v34, %v103_v39  ;;  %v107_v43 = vsel %vm101_vm2, %v94_v36, 920167782  ;;  %v111_v44 = vsel %vm101_vm2, %v97_v37, 1326507024  ;;  %v1044_v39 = vmov 2   ;;  %s929_s1 = sld [smem:[#allocation4 + $0x6]] }
  0x33   :  { %v108_v45 = vsel %vm100_vm4, %v91_v35, %v107_v43  ;;  %v112_v46 = vsel %vm100_vm4, %v94_v36, %v111_v44  ;;  %v105_v47 = vsel %vm99_vm3, %v102_v38, %v104_v42  ;;  %v1048_v42 = vmov 6   ;;  %s930_s2 = sld [smem:[#allocation2 + $0x80]] }
  0x34   :  { %v109_v48 = vsel %vm99_vm3, %v106_v40, %v108_v45  ;;  %v113_v49 = vsel %vm99_vm3, %v110_v41, %v112_v46  ;;  %v121_v54 = vmul.u32 %v114_v32, %v105_v47  ;;  %v1046_v40 = vmov 4   ;;  %s931_s24 = sld [smem:[#allocation4 + $0x80]] }
  0x35   :  { %v1103_v50 = vmul.u32.u64.low %v114_v32, %v113_v49  ;;  %v1104_v51 = vmul.u32.u64.high %v114_v32, %v113_v49, %v1103_v50  ;;  %v1106_v52 = vmul.u32.u64.low %v114_v32, %v109_v48  ;;  %v1107_v53 = vmul.u32.u64.high %v114_v32, %v109_v48, %v1106_v52 }
  0x36   :  { %v1047_v41 = vmov 5   ;;  %v42_v43 = vlaneseq }
  0x37   :  { %vm123_vm5 = vc.u32 %v1104_v51, %v1106_v52  ;;  %v124_v55 = vadd.s32 1, %v1107_v53  ;;  %v122_v2 = vadd.s32 %v1106_v52, %v1104_v51 }
  0x38   :  { %v1119_v45 = vand.u32 127, %v42_v43 }
  0x39   :  { %v125_v56 = vsel %vm123_vm5, %v124_v55, %v1107_v53 }
  0x3a   :  { %v126_v57 = vadd.s32 %v125_v56, %v121_v54  ;;  %v44_v48 = vshra.s32 %v1119_v45, 6  ;;  %v47_v52 = vshra.s32 %v1119_v45, 5  ;;  %v50_v53 = vshra.s32 %v1119_v45, 4 }
  0x3c   :  { %v127_v58 = vadd.s32 536870912, %v126_v57  ;;  %v1122_v50 = vand.u32 1, %v44_v48  ;;  %v1127_v55 = vand.u32 1, %v47_v52  ;;  %v391_v52 = vstv %s384_s12  ;;  %s933_s12 = sld [smem:[#allocation4 + $0x81]] }
  0x3e   :  { %v128_v59 = vshrl.u32 %v127_v58, 30  ;;  %vm46_vm0 = vcmp.eq.s32.totalorder %v1122_v50, 1  ;;  %vm49_vm1 = vcmp.eq.s32.totalorder %v1127_v55, 1 }
  0x40   :  { %v129_v60 = vshll.u32 %v128_v59, 30  ;;  %v152_v17 = vsub.s32 4, %v128_v59 }
  0x42   :  { %v130_v61 = vsub.s32 %v126_v57, %v129_v60  ;;  %v153_v20 = vsel %vm68_vm7, %v152_v17, %v128_v59  ;;  %v53_v57 = vshra.s32 %v1119_v45, 3  ;;  %v1132_v59 = vand.u32 1, %v50_v53 }
  0x43   :  { %v155_v22 = vsel %vm67_vm8, 0, %v153_v20  ;;  %v56_v60 = vshra.s32 %v1119_v45, 2 }
  0x44   :  { %v132_v62 = vsub.s32 0, %v130_v61  ;;  %v262_v23 = vadd.s32 3, %v155_v22  ;;  %v159_v24 = vand.u32 3, %v155_v22  ;;  %vm52_vm2 = vcmp.eq.s32.totalorder %v1132_v59, 1 }
  0x46   :  { %v911_v63 = vmin.u32 %v132_v62, %v130_v61  ;;  %v263_v25 = vand.u32 3, %v262_v23  ;;  %vm164_vm9 = vcmp.eq.s32.totalorder %v159_v24, 2  ;;  %vm161_vm11 = vcmp.eq.s32.totalorder %v159_v24, 0 }
  0x47   :  { %vm160_vm13 = vcmp.lt.s32.totalorder %v159_v24, 2  ;;  %v1136_v62 = vand.u32 1, %v53_v57 }
  0x48   :  { %v134_v0 = vclz %v911_v63  ;;  %vm268_vm10 = vcmp.eq.s32.totalorder %v263_v25, 2  ;;  %vm265_vm12 = vcmp.eq.s32.totalorder %v263_v25, 0  ;;  %vm264_vm14 = vcmp.lt.s32.totalorder %v263_v25, 2 }
  0x49   :  { %vm55_vm3 = vcmp.eq.s32.totalorder %v1136_v62, 1 }
  0x4a   :  { %v912_v1 = vadd.s32 4294967294, %v134_v0  ;;  %v59_v0 = vshra.s32 %v1119_v45, 1 }
  0x4c   :  { %vm913_vm6 = vcmp.lt.s32.totalorder %v912_v1, 0 }
  0x4d   :  { %v137_v4 = vsel %vm913_vm6, 0, %v912_v1 }
  0x4e   :  { %v138_v5 = vsub.s32 32, %v137_v4  ;;  %v139_v7 = vshll.u32 %v130_v61, %v137_v4  ;;  %v142_v8 = vsub.s32 4294967266, %v137_v4 }
  0x50   :  { %v140_v9 = vshrl.u32 %v122_v2, %v138_v5  ;;  %v143_v10 = vadd.s32 127, %v142_v8  ;;  %v1140_v2 = vand.u32 1, %v56_v60  ;;  %v1145_v8 = vand.u32 1, %v59_v0 }
  0x51   :  { %v404_v0 = vstv %s919_s14  ;;  %s935_s14 = sld [smem:[#allocation4 + $0x82]] }
  0x52   :  { %v141_v11 = vor.u32 %v140_v9, %v139_v7  ;;  %v144_v12 = vshll.u32 %v143_v10, 23  ;;  %vm58_vm4 = vcmp.eq.s32.totalorder %v1140_v2, 1  ;;  %vm61_vm5 = vcmp.eq.s32.totalorder %v1145_v8, 1 }
  0x53   :  { %v729_v8 = vshrl.u32 %v42_v43, 7 }
  0x54   :  { %v145_v13 = vor.u32 4788187, %v144_v12  ;;  %v148_v14 = vcvt.s32.f32 %v141_v11 }
  0x56   :  { %v146_v15 = vand.u32 2147483647, %v145_v13  ;;  %v62_v13 = vand.u32 1, %v1119_v45 }
  0x58   :  { %v149_v16 = vmul.f32 %v148_v14, %v146_v15  ;;  %vm1158_vm6 = vcmp.eq.s32.totalorder %v62_v13, 1  ;;  %v417_v13 = vstv %s921_s16  ;;  %s937_s16 = sld [smem:[#allocation4 + $0x83]] }
  0x5a   :  { %v150_v18 = vxor.u32 2147483648, %v149_v16 }
  0x5c   :  { %v151_v19 = vsel %vm68_vm7, %v150_v18, %v149_v16  ;;  %vm822_vm7 = vcmask 1043456  }
  0x5d   :  { %v154_v21 = vsel %vm67_vm8, %v1097_v3, %v151_v19  ;;  %v1045_v3 = vmov 3   ;;  %vm887_vm8 = vcmask 1041409  }
  0x5e   :  { %1002 = vcosq.f32 %v154_v21 }
  0x5f   :  { %1004 = vsinq.f32 %v154_v21 }
  0x6b   :  { %v1003_v26 = vpop.eup %1002 }
  0x6c   :  { %v1005_v27 = vpop.eup %1004  ;;  %v165_v28 = vxor.u32 2147483648, %v1003_v26 }
  0x6d   :  { %v162_v6 = vxor.u32 2147483648, %v1005_v27 }
  0x6e   :  { %v166_v29 = vsel %vm164_vm9, %v165_v28, %v1005_v27  ;;  %v270_v30 = vsel %vm268_vm10, %v165_v28, %v1005_v27  ;;  %vm889_vm9 = vcmask 1042434   ;;  %vm891_vm10 = vcmask 1043459  }
  0x6f   :  { %v163_v31 = vsel %vm161_vm11, %v1003_v26, %v162_v6  ;;  %v267_v32 = vsel %vm265_vm12, %v1003_v26, %v162_v6  ;;  %vm893_vm11 = vcmask 1044484   ;;  %vm895_vm12 = vcmask 1045509  }
  0x70   :  { %v167_v33 = vsel %vm160_vm13, %v163_v31, %v166_v29  ;;  %v271_v34 = vsel %vm264_vm14, %v267_v32, %v270_v30  ;;  %vm897_vm13 = vcmask 1046534   ;;  %vm899_vm14 = vcmask 1047559  }
  0x71   :  { %v168_v35 = vsel %vm158_vm15, nan, %v167_v33  ;;  %v272_v36 = vsel %vm158_vm15, nan, %v271_v34  ;;  %vm902_vm15 = vcmask 31744  }
  0x72   :  { %v273_v37 = vadd.f32 %v272_v36, %v168_v35  ;;  %v274_v38 = vsub.f32 %v168_v35, %v272_v36 }
  0x74   :  { %288 = vperm.xlu1 %992, %v273_v37   ;;  %277 = vperm.xlu0 %991, %v273_v37  }
  0x78   :  { %292 = vperm.xlu1 %992, %v274_v38   ;;  %282 = vperm.xlu0 %991, %v274_v38  }
  0x7c   :  { %994 = vset.pattern.permute.xlu1 %v1044_v39  ;;  %993 = vset.pattern.permute.xlu0 %v1044_v39 }
  0x7d   :  { %302 = vperm.xlu1 %994, %v274_v38   ;;  %298 = vperm.xlu0 %993, %v273_v37  }
  0x81   :  { %995 = vset.pattern.permute.xlu1 %v1045_v3  ;;  %996 = vset.pattern.permute.xlu0 %v1045_v3 }
  0x82   :  { %308 = vperm.xlu1 %995, %v273_v37   ;;  %312 = vperm.xlu0 %996, %v274_v38  }
  0x86   :  { %997 = vset.pattern.permute.xlu1 %v1046_v40  ;;  %998 = vset.pattern.permute.xlu0 %v1047_v41 }
  0x87   :  { %318 = vperm.xlu1 %997, %v273_v37   ;;  %328 = vperm.xlu0 %998, %v273_v37  }
  0x8b   :  { %322 = vperm.xlu1 %997, %v274_v38   ;;  %1001 = vset.pattern.permute.xlu0 %v1048_v42 }
  0x8c   :  { %342 = vperm.xlu0 %1001, %v274_v38  }
  0x8f   :  { %999 = vset.pattern.permute.xlu1 %v1047_v41 }
  0x90   :  { %332 = vperm.xlu1 %999, %v274_v38  }
  0x94   :  { %1000 = vset.pattern.permute.xlu1 %v1048_v42 }
  0x95   :  { %338 = vperm.xlu1 %1000, %v273_v37  }
  0xef   :  { %v289_v44 = vpop.permute.xlu1 %288  ;;  %v278_v46 = vpop.permute.xlu0 %277 }
  0xf3   :  { %v293_v47 = vpop.permute.xlu1 %292  ;;  %v283_v49 = vpop.permute.xlu0 %282 }
  0xf4   :  { %v285_v58 = vsel %vm46_vm0, %v278_v46, %v283_v49  ;;  %v295_v4 = vsel %vm49_vm1, %v289_v44, %v293_v47 }
  0xf5   :  { %v286_v61 = vmul.f32 0.088388346, %v285_v58 }
  0xf7   :  { %v296_v5 = vmul.f32 %v295_v4, %v286_v61 }
  0xf8   :  { %v303_v51 = vpop.permute.xlu1 %302  ;;  %v299_v56 = vpop.permute.xlu0 %298 }
  0xf9   :  { %v305_v9 = vsel %vm52_vm2, %v299_v56, %v303_v51  ;;  %v389_v51 = vstv %s383_s11  ;;  %s932_s11 = sld [smem:[#allocation2 + $0x81]] }
  0xfa   :  { %v306_v12 = vmul.f32 %v305_v9, %v296_v5 }
  0xfd   :  { %v309_v54 = vpop.permute.xlu1 %308  ;;  %v313_v1 = vpop.permute.xlu0 %312 }
  0xfe   :  { %v315_v11 = vsel %vm55_vm3, %v309_v54, %v313_v1 }
  0xff   :  { %v316_v16 = vmul.f32 %v315_v11, %v306_v12  ;;  %v415_v12 = vstv %s920_s15  ;;  %s936_s15 = sld [smem:[#allocation2 + $0x83]] }
 0x102   :  { %v319_v63 = vpop.permute.xlu1 %318  ;;  %v329_v10 = vpop.permute.xlu0 %328 }
 0x106   :  { %v323_v7 = vpop.permute.xlu1 %322 }
 0x107   :  { %v325_v14 = vsel %vm58_vm4, %v319_v63, %v323_v7  ;;  %v343_v19 = vpop.permute.xlu0 %342  ;;  %v402_v63 = vstv %s918_s13  ;;  %s934_s13 = sld [smem:[#allocation2 + $0x82]] }
 0x108   :  { %v326_v18 = vmul.f32 %v325_v14, %v316_v16 }
 0x10b   :  { %v333_v15 = vpop.permute.xlu1 %332 }
 0x10c   :  { %v335_v17 = vsel %vm61_vm5, %v329_v10, %v333_v15 }
 0x10d   :  { %v336_v21 = vmul.f32 %v335_v17, %v326_v18 }
 0x110   :  { %v339_v22 = vpop.permute.xlu1 %338 }
 0x111   :  { %v345_v23 = vsel %vm1158_vm6, %v339_v22, %v343_v19  ;;  %v428_v22 = vstv %s922_s17  ;;  %s938_s17 = sld [smem:[#allocation2 + $0x84]] }
 0x112   :  { %v346_v24 = vmul.f32 %v345_v23, %v336_v21  ;;  %v430_v23 = vstv %s923_s18  ;;  %s939_s18 = sld [smem:[#allocation4 + $0x84]] }
 0x114   :  { %347 = vrot.lane.b32.xlu1 %v346_v24, %s1049_s0 }
 0x118   :  { %349 = vrot.lane.b32.xlu1 %v346_v24, %s1050_s25 }
 0x186   :  { %v348_v25 = vpop.permute.xlu1 %347 }
 0x18a   :  { %v350_v26 = vpop.permute.xlu1 %349 }
 0x18b   :  { %v351_v27 = vsel %vm49_vm1, %v348_v25, %v350_v26 }
 0x18c   :  { %v352_v28 = vsel %vm46_vm0, %v351_v27, %v346_v24 }
 0x18d   :  { %355 = vrot.lane.b32.xlu1 %v352_v28, %s1051_s26  ;;  %353 = vrot.lane.b32.xlu0 %v352_v28, %s1052_s27 }
 0x1ff   :  { %v356_v6 = vpop.permute.xlu1 %355  ;;  %v354_v29 = vpop.permute.xlu0 %353 }
 0x200   :  { %v357_v30 = vsel %vm55_vm3, %v354_v29, %v356_v6 }
 0x201   :  { %v358_v31 = vsel %vm52_vm2, %v357_v30, %v352_v28  ;;  %v441_v30 = vstv %s924_s19  ;;  %s940_s19 = sld [smem:[#allocation2 + $0x85]] }
 0x202   :  { %361 = vrot.lane.b32.xlu1 %v358_v31, %s1053_s28  ;;  %359 = vrot.lane.b32.xlu0 %v358_v31, %s1054_s29 }
 0x274   :  { %v362_v32 = vpop.permute.xlu1 %361  ;;  %v360_v33 = vpop.permute.xlu0 %359 }
 0x275   :  { %v363_v34 = vsel %vm61_vm5, %v360_v33, %v362_v32 }
 0x276   :  { %v364_v35 = vsel %vm58_vm4, %v363_v34, %v358_v31  ;;  %v443_v31 = vstv %s925_s20  ;;  %s941_s20 = sld [smem:[#allocation4 + $0x85]] }
 0x277   :  { %367 = vrot.lane.b32.xlu1 %v364_v35, %s1055_s30  ;;  %365 = vrot.lane.b32.xlu0 %v364_v35, %s1056_s5 }
 0x2e9   :  { %v368_v36 = vpop.permute.xlu1 %367  ;;  %v366_v37 = vpop.permute.xlu0 %365 }
 0x2ea   :  { %v369_v38 = vsel %vm52_vm2, %v366_v37, %v368_v36 }
 0x2eb   :  { %v370_v39 = vsel %vm49_vm1, %v369_v38, %v364_v35 }
 0x2ec   :  { %373 = vrot.lane.b32.xlu1 %v370_v39, %s1057_s6  ;;  %371 = vrot.lane.b32.xlu0 %v370_v39, %s1058_s7 }
 0x35e   :  { %v374_v3 = vpop.permute.xlu1 %373  ;;  %v372_v40 = vpop.permute.xlu0 %371 }
 0x35f   :  { %v375_v41 = vsel %vm58_vm4, %v372_v40, %v374_v3  ;;  %v456_v3 = vstv %s927_s22  ;;  %s943_s22 = sld [smem:[#allocation4 + $0x86]] }
 0x360   :  { %v376_v42 = vsel %vm55_vm3, %v375_v41, %v370_v39  ;;  %v454_v39 = vstv %s926_s21  ;;  %s942_s21 = sld [smem:[#allocation2 + $0x86]] }
 0x361   :  { %379 = vrot.lane.b32.xlu1 %v376_v42, %s1059_s8  ;;  %377 = vrot.lane.b32.xlu0 %v376_v42, %s1060_s9 }
 0x3d3   :  { %v380_v44 = vpop.permute.xlu1 %379  ;;  %v378_v46 = vpop.permute.xlu0 %377 }
 0x3d4   :  { %v381_v47 = vsel %vm1158_vm6, %v378_v46, %v380_v44 }
 0x3d5   :  { %v382_v48 = vsel %vm61_vm5, %v381_v47, %v376_v42 }
 0x3d6   :  { %385 = vrot.lane.b32.xlu0 %v382_v48, %s1061_s10  ;;  %v390_v56 = vmul.f32 %v389_v51, %v382_v48  ;;  %v469_v51 = vstv %s929_s1  ;;  %s945_s1 = sld [smem:[#allocation4 + $0x100]] }
 0x448   :  { %v386_v49 = vpop.permute.xlu0 %385 }
 0x449   :  { %v387_v53 = vsub.f32 0.0, %v386_v49 }
 0x44b   :  { %v388_v54 = vsel %vm46_vm0, %v386_v49, %v387_v53  ;;  %v467_v49 = vstv %s928_s23  ;;  %s944_s23 = sld [smem:[#allocation2 + $0x100]] }
 0x44c   :  { %v392_v57 = vmul.f32 %v391_v52, %v388_v54 }
 0x44e   :  { %v393_v58 = vadd.f32 %v392_v57, %v390_v56 }
 0x450   :  { %396 = vrot.lane.b32.xlu0 %v393_v58, %s1049_s0  ;;  %398 = vrot.lane.b32.xlu1 %v393_v58, %s1050_s25  ;;  %v403_v5 = vmul.f32 %v402_v63, %v393_v58 }
 0x4c2   :  { %v399_v60 = vpop.permute.xlu1 %398  ;;  %v397_v1 = vpop.permute.xlu0 %396 }
 0x4c3   :  { %v400_v61 = vsub.f32 0.0, %v399_v60 }
 0x4c5   :  { %v401_v4 = vsel %vm49_vm1, %v397_v1, %v400_v61 }
 0x4c6   :  { %v405_v7 = vmul.f32 %v404_v0, %v401_v4 }
 0x4c8   :  { %v406_v9 = vadd.f32 %v405_v7, %v403_v5 }
 0x4ca   :  { %409 = vrot.lane.b32.xlu0 %v406_v9, %s1056_s5  ;;  %411 = vrot.lane.b32.xlu1 %v406_v9, %s1055_s30  ;;  %v416_v16 = vmul.f32 %v415_v12, %v406_v9 }
 0x53c   :  { %v412_v10 = vpop.permute.xlu1 %411  ;;  %v410_v14 = vpop.permute.xlu0 %409 }
 0x53d   :  { %v413_v11 = vsub.f32 0.0, %v412_v10 }
 0x53f   :  { %v414_v15 = vsel %vm52_vm2, %v410_v14, %v413_v11 }
 0x540   :  { %v418_v17 = vmul.f32 %v417_v13, %v414_v15 }
 0x542   :  { %v419_v18 = vadd.f32 %v418_v17, %v416_v16 }
 0x544   :  { %422 = vrot.lane.b32.xlu0 %v419_v18, %s1052_s27  ;;  %424 = vrot.lane.b32.xlu1 %v419_v18, %s1051_s26  ;;  %v429_v26 = vmul.f32 %v428_v22, %v419_v18 }
 0x5b6   :  { %v425_v19 = vpop.permute.xlu1 %424  ;;  %v423_v24 = vpop.permute.xlu0 %422 }
 0x5b7   :  { %v426_v21 = vsub.f32 0.0, %v425_v19 }
 0x5b9   :  { %v427_v25 = vsel %vm55_vm3, %v423_v24, %v426_v21 }
 0x5ba   :  { %v431_v27 = vmul.f32 %v430_v23, %v427_v25 }
 0x5bc   :  { %v432_v28 = vadd.f32 %v431_v27, %v429_v26  ;;  %v514_v26 = vstv %s930_s2  ;;  %v516_v27 = vstv %s931_s24  ;;  %s946_s2 = sld [smem:[#allocation2 + $0x101]] }
 0x5bd   :  { %s947_s24 = sld [smem:[#allocation4 + $0x101]] }
 0x5be   :  { %435 = vrot.lane.b32.xlu0 %v432_v28, %s1058_s7  ;;  %437 = vrot.lane.b32.xlu1 %v432_v28, %s1057_s6  ;;  %v442_v34 = vmul.f32 %v441_v30, %v432_v28 }
 0x630   :  { %v438_v6 = vpop.permute.xlu1 %437  ;;  %v436_v32 = vpop.permute.xlu0 %435 }
 0x631   :  { %v439_v29 = vsub.f32 0.0, %v438_v6 }
 0x633   :  { %v440_v33 = vsel %vm58_vm4, %v436_v32, %v439_v29 }
 0x634   :  { %v444_v35 = vmul.f32 %v443_v31, %v440_v33 }
 0x636   :  { %v445_v36 = vadd.f32 %v444_v35, %v442_v34  ;;  %v527_v34 = vstv %s932_s11  ;;  %v529_v35 = vstv %s933_s12 }
 0x638   :  { %448 = vrot.lane.b32.xlu0 %v445_v36, %s1054_s29  ;;  %450 = vrot.lane.b32.xlu1 %v445_v36, %s1053_s28  ;;  %v455_v42 = vmul.f32 %v454_v39, %v445_v36 }
 0x6aa   :  { %v451_v37 = vpop.permute.xlu1 %450  ;;  %v449_v40 = vpop.permute.xlu0 %448 }
 0x6ab   :  { %v452_v38 = vsub.f32 0.0, %v451_v37 }
 0x6ad   :  { %v453_v41 = vsel %vm61_vm5, %v449_v40, %v452_v38 }
 0x6ae   :  { %v457_v44 = vmul.f32 %v456_v3, %v453_v41 }
 0x6b0   :  { %v458_v46 = vadd.f32 %v457_v44, %v455_v42  ;;  %v540_v42 = vstv %s934_s13  ;;  %v542_v44 = vstv %s935_s14 }
 0x6b2   :  { %461 = vrot.lane.b32.xlu0 %v458_v46, %s1060_s9  ;;  %463 = vrot.lane.b32.xlu1 %v458_v46, %s1059_s8  ;;  %v468_v54 = vmul.f32 %v467_v49, %v458_v46 }
 0x724   :  { %v464_v47 = vpop.permute.xlu1 %463  ;;  %v462_v52 = vpop.permute.xlu0 %461 }
 0x725   :  { %v465_v48 = vsub.f32 0.0, %v464_v47 }
 0x727   :  { %v466_v53 = vsel %vm1158_vm6, %v462_v52, %v465_v48 }
 0x728   :  { %v470_v56 = vmul.f32 %v469_v51, %v466_v53 }
 0x72a   :  { %v471_v57 = vadd.f32 %v470_v56, %v468_v54  ;;  %v553_v54 = vstv %s936_s15  ;;  %v555_v56 = vstv %s937_s16 }
 0x72c   :  { %474 = vrot.lane.b32.xlu0 %v471_v57, %s1050_s25  ;;  %472 = vrot.lane.b32.xlu1 %v471_v57, %s1049_s0 }
 0x79e   :  { %v475_v58 = vpop.permute.xlu0 %474  ;;  %v473_v60 = vpop.permute.xlu1 %472 }
 0x79f   :  { %v476_v61 = vsel %vm49_vm1, %v473_v60, %v475_v58 }
 0x7a0   :  { %v477_v63 = vsel %vm46_vm0, %v476_v61, %v471_v57 }
 0x7a1   :  { %480 = vrot.lane.b32.xlu0 %v477_v63, %s1051_s26  ;;  %478 = vrot.lane.b32.xlu1 %v477_v63, %s1052_s27 }
 0x813   :  { %v481_v0 = vpop.permute.xlu0 %480  ;;  %v479_v1 = vpop.permute.xlu1 %478 }
 0x814   :  { %v482_v4 = vsel %vm55_vm3, %v479_v1, %v481_v0 }
 0x815   :  { %v483_v5 = vsel %vm52_vm2, %v482_v4, %v477_v63  ;;  %v566_v4 = vstv %s938_s17 }
 0x816   :  { %486 = vrot.lane.b32.xlu0 %v483_v5, %s1053_s28  ;;  %484 = vrot.lane.b32.xlu1 %v483_v5, %s1054_s29 }
 0x888   :  { %v487_v7 = vpop.permute.xlu0 %486  ;;  %v485_v9 = vpop.permute.xlu1 %484 }
 0x889   :  { %v488_v10 = vsel %vm61_vm5, %v485_v9, %v487_v7 }
 0x88a   :  { %v489_v11 = vsel %vm58_vm4, %v488_v10, %v483_v5  ;;  %v568_v5 = vstv %s939_s18 }
 0x88b   :  { %492 = vrot.lane.b32.xlu0 %v489_v11, %s1055_s30  ;;  %490 = vrot.lane.b32.xlu1 %v489_v11, %s1056_s5 }
 0x8fd   :  { %v493_v12 = vpop.permute.xlu0 %492  ;;  %v491_v13 = vpop.permute.xlu1 %490 }
 0x8fe   :  { %v494_v14 = vsel %vm52_vm2, %v491_v13, %v493_v12 }
 0x8ff   :  { %v495_v15 = vsel %vm49_vm1, %v494_v14, %v489_v11 }
 0x900   :  { %498 = vrot.lane.b32.xlu0 %v495_v15, %s1057_s6  ;;  %496 = vrot.lane.b32.xlu1 %v495_v15, %s1058_s7 }
 0x972   :  { %v499_v16 = vpop.permute.xlu0 %498  ;;  %v497_v17 = vpop.permute.xlu1 %496 }
 0x973   :  { %v500_v18 = vsel %vm58_vm4, %v497_v17, %v499_v16  ;;  %v581_v16 = vstv %s941_s20 }
 0x974   :  { %v501_v19 = vsel %vm55_vm3, %v500_v18, %v495_v15  ;;  %v579_v15 = vstv %s940_s19 }
 0x975   :  { %504 = vrot.lane.b32.xlu0 %v501_v19, %s1059_s8  ;;  %502 = vrot.lane.b32.xlu1 %v501_v19, %s1060_s9 }
 0x9e7   :  { %v505_v21 = vpop.permute.xlu0 %504  ;;  %v503_v22 = vpop.permute.xlu1 %502 }
 0x9e8   :  { %v506_v23 = vsel %vm1158_vm6, %v503_v22, %v505_v21 }
 0x9e9   :  { %v507_v24 = vsel %vm61_vm5, %v506_v23, %v501_v19 }
 0x9ea   :  { %510 = vrot.lane.b32.xlu1 %v507_v24, %s1061_s10  ;;  %v515_v29 = vmul.f32 %v514_v26, %v507_v24  ;;  %v594_v26 = vstv %s943_s22 }
 0xa5c   :  { %v511_v25 = vpop.permute.xlu1 %510 }
 0xa5d   :  { %v512_v28 = vsub.f32 0.0, %v511_v25 }
 0xa5f   :  { %v513_v6 = vsel %vm46_vm0, %v511_v25, %v512_v28  ;;  %v592_v25 = vstv %s942_s21 }
 0xa60   :  { %v517_v30 = vmul.f32 %v516_v27, %v513_v6 }
 0xa62   :  { %v518_v31 = vadd.f32 %v517_v30, %v515_v29 }
 0xa64   :  { %521 = vrot.lane.b32.xlu1 %v518_v31, %s1049_s0  ;;  %523 = vrot.lane.b32.xlu0 %v518_v31, %s1050_s25  ;;  %v528_v38 = vmul.f32 %v527_v34, %v518_v31 }
 0xad6   :  { %v524_v32 = vpop.permute.xlu0 %523  ;;  %v522_v36 = vpop.permute.xlu1 %521 }
 0xad7   :  { %v525_v33 = vsub.f32 0.0, %v524_v32 }
 0xad9   :  { %v526_v37 = vsel %vm49_vm1, %v522_v36, %v525_v33 }
 0xada   :  { %v530_v39 = vmul.f32 %v529_v35, %v526_v37 }
 0xadc   :  { %v531_v3 = vadd.f32 %v530_v39, %v528_v38 }
 0xade   :  { %534 = vrot.lane.b32.xlu1 %v531_v3, %s1056_s5  ;;  %536 = vrot.lane.b32.xlu0 %v531_v3, %s1055_s30  ;;  %v541_v48 = vmul.f32 %v540_v42, %v531_v3 }
 0xb50   :  { %v537_v40 = vpop.permute.xlu0 %536  ;;  %v535_v46 = vpop.permute.xlu1 %534 }
 0xb51   :  { %v538_v41 = vsub.f32 0.0, %v537_v40 }
 0xb53   :  { %v539_v47 = vsel %vm52_vm2, %v535_v46, %v538_v41 }
 0xb54   :  { %v543_v49 = vmul.f32 %v542_v44, %v539_v47 }
 0xb56   :  { %v544_v51 = vadd.f32 %v543_v49, %v541_v48 }
 0xb58   :  { %547 = vrot.lane.b32.xlu1 %v544_v51, %s1052_s27  ;;  %549 = vrot.lane.b32.xlu0 %v544_v51, %s1051_s26  ;;  %v554_v60 = vmul.f32 %v553_v54, %v544_v51 }
 0xbca   :  { %v550_v52 = vpop.permute.xlu0 %549  ;;  %v548_v57 = vpop.permute.xlu1 %547 }
 0xbcb   :  { %v551_v53 = vsub.f32 0.0, %v550_v52 }
 0xbcd   :  { %v552_v58 = vsel %vm55_vm3, %v548_v57, %v551_v53 }
 0xbce   :  { %v556_v61 = vmul.f32 %v555_v56, %v552_v58 }
 0xbd0   :  { %v557_v63 = vadd.f32 %v556_v61, %v554_v60  ;;  %v639_v60 = vstv %s944_s23  ;;  %v641_v61 = vstv %s945_s1 }
 0xbd2   :  { %560 = vrot.lane.b32.xlu1 %v557_v63, %s1058_s7  ;;  %562 = vrot.lane.b32.xlu0 %v557_v63, %s1057_s6  ;;  %v567_v10 = vmul.f32 %v566_v4, %v557_v63 }
 0xc44   :  { %v563_v0 = vpop.permute.xlu0 %562  ;;  %v561_v7 = vpop.permute.xlu1 %560 }
 0xc45   :  { %v564_v1 = vsub.f32 0.0, %v563_v0 }
 0xc47   :  { %v565_v9 = vsel %vm58_vm4, %v561_v7, %v564_v1 }
 0xc48   :  { %v569_v11 = vmul.f32 %v568_v5, %v565_v9 }
 0xc4a   :  { %v570_v12 = vadd.f32 %v569_v11, %v567_v10  ;;  %v652_v10 = vstv %s946_s2  ;;  %v654_v11 = vstv %s947_s24 }
 0xc4c   :  { %573 = vrot.lane.b32.xlu1 %v570_v12, %s1054_s29  ;;  %575 = vrot.lane.b32.xlu0 %v570_v12, %s1053_s28  ;;  %v580_v19 = vmul.f32 %v579_v15, %v570_v12 }
 0xcbe   :  { %v576_v13 = vpop.permute.xlu0 %575  ;;  %v574_v17 = vpop.permute.xlu1 %573 }
 0xcbf   :  { %v577_v14 = vsub.f32 0.0, %v576_v13 }
 0xcc1   :  { %v578_v18 = vsel %vm61_vm5, %v574_v17, %v577_v14 }
 0xcc2   :  { %v582_v21 = vmul.f32 %v581_v16, %v578_v18 }
 0xcc4   :  { %v583_v22 = vadd.f32 %v582_v21, %v580_v19 }
 0xcc6   :  { %586 = vrot.lane.b32.xlu1 %v583_v22, %s1060_s9  ;;  %588 = vrot.lane.b32.xlu0 %v583_v22, %s1059_s8  ;;  %v593_v6 = vmul.f32 %v592_v25, %v583_v22 }
 0xd38   :  { %v589_v23 = vpop.permute.xlu0 %588  ;;  %v587_v27 = vpop.permute.xlu1 %586 }
 0xd39   :  { %v590_v24 = vsub.f32 0.0, %v589_v23 }
 0xd3b   :  { %v591_v28 = vsel %vm1158_vm6, %v587_v27, %v590_v24 }
 0xd3c   :  { %v595_v29 = vmul.f32 %v594_v26, %v591_v28 }
 0xd3e   :  { %v596_v30 = vadd.f32 %v595_v29, %v593_v6 }
 0xd40   :  { %599 = vrot.lane.b32.xlu1 %v596_v30, %s1050_s25  ;;  %597 = vrot.lane.b32.xlu0 %v596_v30, %s1049_s0 }
 0xdb2   :  { %v600_v31 = vpop.permute.xlu1 %599  ;;  %v598_v32 = vpop.permute.xlu0 %597 }
 0xdb3   :  { %v601_v33 = vsel %vm49_vm1, %v598_v32, %v600_v31 }
 0xdb4   :  { %v602_v34 = vsel %vm46_vm0, %v601_v33, %v596_v30 }
 0xdb5   :  { %605 = vrot.lane.b32.xlu1 %v602_v34, %s1051_s26  ;;  %603 = vrot.lane.b32.xlu0 %v602_v34, %s1052_s27 }
 0xe27   :  { %v606_v35 = vpop.permute.xlu1 %605  ;;  %v604_v36 = vpop.permute.xlu0 %603 }
 0xe28   :  { %v607_v37 = vsel %vm55_vm3, %v604_v36, %v606_v35 }
 0xe29   :  { %v608_v38 = vsel %vm52_vm2, %v607_v37, %v602_v34 }
 0xe2a   :  { %611 = vrot.lane.b32.xlu1 %v608_v38, %s1053_s28  ;;  %609 = vrot.lane.b32.xlu0 %v608_v38, %s1054_s29 }
 0xe9c   :  { %v612_v39 = vpop.permute.xlu1 %611  ;;  %v610_v3 = vpop.permute.xlu0 %609 }
 0xe9d   :  { %v613_v40 = vsel %vm61_vm5, %v610_v3, %v612_v39 }
 0xe9e   :  { %v614_v41 = vsel %vm58_vm4, %v613_v40, %v608_v38 }
 0xe9f   :  { %617 = vrot.lane.b32.xlu1 %v614_v41, %s1055_s30  ;;  %615 = vrot.lane.b32.xlu0 %v614_v41, %s1056_s5 }
 0xf11   :  { %v618_v42 = vpop.permute.xlu1 %617  ;;  %v616_v44 = vpop.permute.xlu0 %615 }
 0xf12   :  { %v619_v46 = vsel %vm52_vm2, %v616_v44, %v618_v42 }
 0xf13   :  { %v620_v47 = vsel %vm49_vm1, %v619_v46, %v614_v41 }
 0xf14   :  { %623 = vrot.lane.b32.xlu1 %v620_v47, %s1057_s6  ;;  %621 = vrot.lane.b32.xlu0 %v620_v47, %s1058_s7 }
 0xf86   :  { %v624_v48 = vpop.permute.xlu1 %623  ;;  %v622_v49 = vpop.permute.xlu0 %621 }
 0xf87   :  { %v625_v51 = vsel %vm58_vm4, %v622_v49, %v624_v48  ;;  %v1062_v49 = vmov 1966171168  }
 0xf88   :  { %v626_v52 = vsel %vm55_vm3, %v625_v51, %v620_v47  ;;  %v726_v51 = vunpack.c.l.s4 %v1062_v49 }
 0xf89   :  { %629 = vrot.lane.b32.xlu1 %v626_v52, %s1059_s8  ;;  %627 = vrot.lane.b32.xlu0 %v626_v52, %s1060_s9 }
 0xffb   :  { %v630_v53 = vpop.permute.xlu1 %629  ;;  %v628_v54 = vpop.permute.xlu0 %627 }
 0xffc   :  { %v631_v56 = vsel %vm1158_vm6, %v628_v54, %v630_v53 }
 0xffd   :  { %v632_v57 = vsel %vm61_vm5, %v631_v56, %v626_v52 }
 0xffe   :  { %635 = vrot.lane.b32.xlu0 %v632_v57, %s1061_s10  ;;  %v640_v1 = vmul.f32 %v639_v60, %v632_v57  ;;  %s949_s10 = sld [smem:[#allocation4 + $0x102]] }
0x1004   :  { %v667_v19 = vstv %s949_s10 }
0x1070   :  { %v636_v58 = vpop.permute.xlu0 %635 }
0x1071   :  { %v637_v63 = vsub.f32 0.0, %v636_v58 }
0x1073   :  { %v638_v0 = vsel %vm46_vm0, %v636_v58, %v637_v63  ;;  %v727_v58 = vunpack.c.0.s8 %v726_v51 }
0x1074   :  { %v642_v4 = vmul.f32 %v641_v61, %v638_v0 }
0x1076   :  { %v643_v5 = vadd.f32 %v642_v4, %v640_v1  ;;  %v730_v1 = vsub.s32 %v727_v58, %v729_v8 }
0x1078   :  { %646 = vrot.lane.b32.xlu0 %v643_v5, %s1049_s0  ;;  %648 = vrot.lane.b32.xlu1 %v643_v5, %s1050_s25  ;;  %v653_v14 = vmul.f32 %v652_v10, %v643_v5  ;;  %s948_s0 = sld [smem:[#allocation2 + $0x102]] }
0x1079   :  { %s950_s25 = sld [smem:[#allocation2 + $0x103]] }
0x107e   :  { %v665_v18 = vstv %s948_s0 }
0x107f   :  { %v678_v27 = vstv %s950_s25 }
0x10ea   :  { %v649_v7 = vpop.permute.xlu1 %648  ;;  %v647_v12 = vpop.permute.xlu0 %646 }
0x10eb   :  { %v650_v9 = vsub.f32 0.0, %v649_v7 }
0x10ed   :  { %v651_v13 = vsel %vm49_vm1, %v647_v12, %v650_v9  ;;  %v776_v9 = vsub.s32 0, %v729_v8 }
0x10ee   :  { %v655_v50 = vmul.f32 %v654_v11, %v651_v13  ;;  %v773_v13 = vld [vmem:[%s1372_s3] sm:$0xf] }
0x10f0   :  { %v656_v15 = vadd.f32 %v655_v50, %v653_v14 }
0x10f2   :  { %659 = vrot.lane.b32.xlu0 %v656_v15, %s1056_s5  ;;  %661 = vrot.lane.b32.xlu1 %v656_v15, %s1055_s30  ;;  %v666_v23 = vmul.f32 %v665_v18, %v656_v15  ;;  %s951_s5 = sld [smem:[#allocation4 + $0x103]] }
0x10f3   :  { %s953_s30 = sld [smem:[#allocation4 + $0x104]] }
0x10f8   :  { %v680_v28 = vstv %s951_s5 }
0x10f9   :  { %v693_v35 = vstv %s953_s30 }
0x1164   :  { %v662_v16 = vpop.permute.xlu1 %661  ;;  %v660_v21 = vpop.permute.xlu0 %659 }
0x1165   :  { %v663_v17 = vsub.f32 0.0, %v662_v16 }
0x1167   :  { %v664_v22 = vsel %vm52_vm2, %v660_v21, %v663_v17 }
0x1168   :  { %v668_v55 = vmul.f32 %v667_v19, %v664_v22 }
0x116a   :  { %v669_v24 = vadd.f32 %v668_v55, %v666_v23 }
0x116c   :  { %672 = vrot.lane.b32.xlu0 %v669_v24, %s1052_s27  ;;  %674 = vrot.lane.b32.xlu1 %v669_v24, %s1051_s26  ;;  %v679_v30 = vmul.f32 %v678_v27, %v669_v24  ;;  %s952_s27 = sld [smem:[#allocation2 + $0x104]] }
0x116d   :  { %s954_s26 = sld [smem:[#allocation2 + $0x105]] }
0x1172   :  { %v691_v34 = vstv %s952_s27 }
0x1173   :  { %v704_v41 = vstv %s954_s26 }
0x11de   :  { %v675_v25 = vpop.permute.xlu1 %674  ;;  %v673_v6 = vpop.permute.xlu0 %672 }
0x11df   :  { %v676_v26 = vsub.f32 0.0, %v675_v25 }
0x11e1   :  { %v677_v29 = vsel %vm55_vm3, %v673_v6, %v676_v26 }
0x11e2   :  { %v681_v59 = vmul.f32 %v680_v28, %v677_v29 }
0x11e4   :  { %v682_v31 = vadd.f32 %v681_v59, %v679_v30 }
0x11e6   :  { %685 = vrot.lane.b32.xlu0 %v682_v31, %s1058_s7  ;;  %687 = vrot.lane.b32.xlu1 %v682_v31, %s1057_s6  ;;  %v692_v38 = vmul.f32 %v691_v34, %v682_v31  ;;  %s955_s7 = sld [smem:[#allocation4 + $0x105]] }
0x11e7   :  { %s957_s6 = sld [smem:[#allocation4 + $0x106]] }
0x11ec   :  { %v706_v42 = vstv %s955_s7 }
0x11ed   :  { %v719_v54 = vstv %s957_s6 }
0x1258   :  { %v688_v32 = vpop.permute.xlu1 %687  ;;  %v686_v36 = vpop.permute.xlu0 %685 }
0x1259   :  { %v689_v33 = vsub.f32 0.0, %v688_v32 }
0x125b   :  { %v690_v37 = vsel %vm58_vm4, %v686_v36, %v689_v33 }
0x125c   :  { %v694_v62 = vmul.f32 %v693_v35, %v690_v37 }
0x125e   :  { %v695_v39 = vadd.f32 %v694_v62, %v692_v38 }
0x1260   :  { %698 = vrot.lane.b32.xlu0 %v695_v39, %s1054_s29  ;;  %700 = vrot.lane.b32.xlu1 %v695_v39, %s1053_s28  ;;  %v705_v47 = vmul.f32 %v704_v41, %v695_v39  ;;  %s956_s29 = sld [smem:[#allocation2 + $0x106]] }
0x1266   :  { %v717_v53 = vstv %s956_s29 }
0x12d2   :  { %v701_v3 = vpop.permute.xlu1 %700  ;;  %v699_v44 = vpop.permute.xlu0 %698 }
0x12d3   :  { %v702_v40 = vsub.f32 0.0, %v701_v3 }
0x12d5   :  { %v703_v46 = vsel %vm61_vm5, %v699_v44, %v702_v40  ;;  %v857_v40 = vsub.s32 %v1119_v45, %v729_v8 }
0x12d6   :  { %v707_v2 = vmul.f32 %v706_v42, %v703_v46 }
0x12d8   :  { %v708_v48 = vadd.f32 %v707_v2, %v705_v47 }
0x12da   :  { %711 = vrot.lane.b32.xlu0 %v708_v48, %s1060_s9  ;;  %713 = vrot.lane.b32.xlu1 %v708_v48, %s1059_s8  ;;  %v718_v61 = vmul.f32 %v717_v53, %v708_v48 }
0x134c   :  { %v714_v52 = vpop.permute.xlu1 %713  ;;  %v712_v57 = vpop.permute.xlu0 %711 }
0x134d   :  { %v715_v56 = vsub.f32 0.0, %v714_v52 }
0x134f   :  { %v716_v60 = vsel %vm1158_vm6, %v712_v57, %v715_v56 }
0x1350   :  { %v720_v63 = vmul.f32 %v719_v54, %v716_v60 }
0x1352   :  { %v721_v0 = vadd.f32 %v720_v63, %v718_v61 }
0x1354   :  { %v722_v4 = vmul.f32 %v721_v0, %v721_v0 }
0x1356   :  { %v724_v5 = vcombine.high %v722_v4, %v722_v4  ;;  %v731_v7 = vrot.slane %v722_v4, %v730_v1 }
0x1358   :  { %v747_v10 = vrot.slane %v731_v7, %v730_v1  ;;  %v739_v11 = vcombine.high %v731_v7, %v731_v7  ;;  %v738_v12 = vrot.slane %v724_v5, %v730_v1 }
0x135a   :  { %v777_v14 = vrot.slane %v747_v10, %v776_v9  ;;  %v761_v43 = vrot.slane %v739_v11, %v730_v1  ;;  %v769_v50 = vcombine.high %v747_v10, %v747_v10  ;;  %v740_v20 = vcombine.high %v738_v12, %v738_v12 }
0x135b   :  { %v754_v15 = vrot.slane %v738_v12, %v730_v1 }
0x135c   :  { %v814_v16 = vmul.f32 %v777_v14, %v773_v13  ;;  %v781_v17 = vrot.slane %v761_v43, %v776_v9  ;;  %v771_v18 = vcombine.high %v761_v43, %v761_v43  ;;  %v785_v19 = vrot.slane %v769_v50, %v776_v9 }
0x135d   :  { %v768_v21 = vrot.slane %v740_v20, %v730_v1  ;;  %v793_v25 = vrot.slane %v754_v15, %v776_v9  ;;  %v770_v29 = vcombine.high %v754_v15, %v754_v15 }
0x135e   :  { %v823_v22 = vsel %vm822_vm7, %v814_v16, 0.0  ;;  %v815_v23 = vmul.f32 %v781_v17, %v773_v13  ;;  %v789_v55 = vrot.slane %v771_v18, %v776_v9  ;;  %v816_v6 = vmul.f32 %v785_v19, %v773_v13 }
0x135f   :  { %824 = vadd.xlane.f32.xlu1 %v823_v22  ;;  %v797_v24 = vrot.slane %v768_v21, %v776_v9  ;;  %v772_v26 = vcombine.high %v768_v21, %v768_v21  ;;  %v818_v33 = vmul.f32 %v793_v25, %v773_v13  ;;  %v801_v34 = vrot.slane %v770_v29, %v776_v9 }
0x1360   :  { %v826_v27 = vsel %vm822_vm7, %v815_v23, 0.0  ;;  %v817_v28 = vmul.f32 %v789_v55, %v773_v13  ;;  %v829_v32 = vsel %vm822_vm7, %v816_v6, 0.0 }
0x1361   :  { %827 = vadd.xlane.f32.xlu0 %v826_v27  ;;  %v819_v59 = vmul.f32 %v797_v24, %v773_v13  ;;  %v805_v31 = vrot.slane %v772_v26, %v776_v9  ;;  %v835_v37 = vsel %vm822_vm7, %v818_v33, 0.0  ;;  %v820_v38 = vmul.f32 %v801_v34, %v773_v13 }
0x1362   :  { %v832_v30 = vsel %vm822_vm7, %v817_v28, 0.0 }
0x1363   :  { %833 = vadd.xlane.f32.xlu1 %v832_v30  ;;  %v838_v35 = vsel %vm822_vm7, %v819_v59, 0.0  ;;  %v821_v36 = vmul.f32 %v805_v31, %v773_v13  ;;  %v841_v39 = vsel %vm822_vm7, %v820_v38, 0.0 }
0x1365   :  { %830 = vadd.xlane.f32.xlu0 %v829_v32  ;;  %v844_v62 = vsel %vm822_vm7, %v821_v36, 0.0 }
0x1367   :  { %839 = vadd.xlane.f32.xlu1 %v838_v35 }
0x1369   :  { %836 = vadd.xlane.f32.xlu0 %v835_v37 }
0x136b   :  { %845 = vadd.xlane.f32.xlu1 %v844_v62 }
0x136d   :  { %842 = vadd.xlane.f32.xlu0 %v841_v39 }
0x13e8   :  { %v825_v3 = vpop.xlane.xlu1 %824 }
0x13e9   :  { %v858_v46 = vrot.slane %v825_v3, %v857_v40 }
0x13ea   :  { %v828_v41 = vpop.xlane.xlu0 %827 }
0x13eb   :  { %v862_v42 = vrot.slane %v828_v41, %v857_v40 }
0x13ec   :  { %v834_v44 = vpop.xlane.xlu1 %833 }
0x13ed   :  { %v888_v48 = vsel %vm887_vm8, %v862_v42, %v858_v46  ;;  %v870_v52 = vrot.slane %v834_v44, %v857_v40 }
0x13ee   :  { %v831_v47 = vpop.xlane.xlu0 %830 }
0x13ef   :  { %v866_v2 = vrot.slane %v831_v47, %v857_v40 }
0x13f0   :  { %v840_v49 = vpop.xlane.xlu1 %839 }
0x13f1   :  { %v890_v51 = vsel %vm889_vm9, %v866_v2, %v888_v48  ;;  %v878_v45 = vrot.slane %v840_v49, %v857_v40 }
0x13f2   :  { %v837_v53 = vpop.xlane.xlu0 %836  ;;  %v892_v56 = vsel %vm891_vm10, %v870_v52, %v890_v51 }
0x13f3   :  { %v874_v54 = vrot.slane %v837_v53, %v857_v40 }
0x13f4   :  { %v846_v58 = vpop.xlane.xlu1 %845 }
0x13f5   :  { %v894_v57 = vsel %vm893_vm11, %v874_v54, %v892_v56  ;;  %v886_v61 = vrot.slane %v846_v58, %v857_v40 }
0x13f6   :  { %v843_v8 = vpop.xlane.xlu0 %842  ;;  %v896_v63 = vsel %vm895_vm12, %v878_v45, %v894_v57 }
0x13f7   :  { %v882_v60 = vrot.slane %v843_v8, %v857_v40 }
0x13f9   :  { %v898_v0 = vsel %vm897_vm13, %v882_v60, %v896_v63 }
0x13fa   :  { %v900_v1 = vsel %vm899_vm14, %v886_v61, %v898_v0 }
0x13fb   :  { %903 = vst.msk [vmem:[%s1373_s4] sm:$0xff] %vm902_vm15, %v900_v1 }
0x13fc   :  { %908 = vsyncpa [#allocation3], 1 }
0x13fd   :  { %909 = vsyncpa [#allocation5], 1 }

</bundles_post_ra>
